<compile_context>
chip_gen: v7x
topology: tpu7x:2x2x1
jax: 0.10.0
libtpu: 0.0.40
codegen_flags: <defaults>
</compile_context>

<pallas_src>
import jax
import jax.numpy as jnp
import numpy as np
from jax.experimental import pallas as pl
from jax.experimental.pallas import tpu as pltpu


# For output row oh = 2*i + r, the valid (input-row offset dh, kernel-row kh)
# pairs of ConvTranspose2d(kernel=4, stride=2, padding=1) are:
#   r = 0 -> (0, 1), (-1, 3)
#   r = 1 -> (+1, 0), (0, 2)
# (identically along W for the column phase s).
_PAIRS = (((0, 1), (-1, 3)), ((1, 0), (0, 2)))


def _trconv_kernel(x_ref, xt_ref, xb_ref, w_ref, shift_ref, out_ref, xpad_ref):
    # x_ref    : (1, TH, W, Cin)        bf16  NHWC input H-tile
    # xt_ref   : (1, 1,  W, Cin)        bf16  row just above the tile (clamped)
    # xb_ref   : (1, 1,  W, Cin)        bf16  row just below the tile (clamped)
    # w_ref    : (9*Cin, 4*Cpad)        bf16  merged tap weights (BN scale folded)
    # shift_ref: (1, 4*Cpad)            f32   BN shift, tiled per phase
    # out_ref  : (1, TH*W, 4*Cpad)      bf16  4 phases concatenated along lanes
    # xpad_ref : (TH+2, W+2, Cin) VMEM  bf16  halo-padded input scratch
    TH, W, Cin = x_ref.shape[1], x_ref.shape[2], x_ref.shape[3]
    h = pl.program_id(1)
    nh = pl.num_programs(1)

    # ---- build the halo-padded tile in VMEM (border ring only is zeroed) ----
    zrow = jnp.zeros((1, W, Cin), xpad_ref.dtype)
    xpad_ref[0:1, 1:W + 1, :] = jnp.where(h > 0, xt_ref[0], zrow)
    xpad_ref[1:TH + 1, 1:W + 1, :] = x_ref[0]
    xpad_ref[TH + 1:TH + 2, 1:W + 1, :] = jnp.where(h < nh - 1, xb_ref[0], zrow)
    zcol = jnp.zeros((TH + 2, 1, Cin), xpad_ref.dtype)
    xpad_ref[:, 0:1, :] = zcol
    xpad_ref[:, W + 1:W + 2, :] = zcol

    # ---- 9 shifted windows -> one lane-concatenated LHS ---------------------
    # The 3 W (sublane) shifts are done once; per-dh windows are fully static
    # row slices of the flattened slabs.
    slabs = [xpad_ref[:, 1 + dw:1 + dw + W, :].reshape((TH + 2) * W, Cin)
             for dw in (-1, 0, 1)]
    windows = []
    for dh in (-1, 0, 1):
        start = (1 + dh) * W                       # static
        for dw in (-1, 0, 1):
            windows.append(slabs[dw + 1][start:start + TH * W, :])
    lhs = jnp.concatenate(windows, axis=1)         # (TH*W, 9*Cin) bf16

    # ---- single MXU matmul covering all 4 output phases ---------------------
    acc = jnp.dot(lhs, w_ref[...], preferred_element_type=jnp.float32)
    y = jnp.maximum(acc + shift_ref[...], 0.0)     # BN scale folded into w
    out_ref[0] = y.astype(out_ref.dtype)           # lane-dense single store


def _vmem_limit_bytes():
    """Generation-aware scoped-VMEM limit (~3/4 of per-core physical VMEM)."""
    cap = 128 * 1024 * 1024
    try:
        cap = int(pltpu.get_tpu_info().vmem_capacity_bytes)
    except Exception:
        pass
    return max((3 * cap) // 4, 32 * 1024 * 1024)


def _pick_tile_h(H, W, cin, cpad, budget_bytes):
    """Largest divisor of H whose per-step VMEM footprint fits the budget."""
    def footprint(th):
        x_blk = 2 * th * W * cin * 2               # bf16, double-buffered
        out_blk = 2 * th * W * 4 * cpad * 2        # bf16, double-buffered
        pad = (th + 2) * (W + 2) * cin * 2
        slabs = 3 * (th + 2) * W * cin * 2
        lhs = th * W * 9 * cin * 2
        acc = th * W * 4 * cpad * 4
        return x_blk + out_blk + pad + slabs + lhs + acc

    fallback = H
    for th in range(H, 0, -1):
        if H % th:
            continue
        if th != H and (th * W) % 8:
            continue                                # keep output blocks 8-row aligned
        if footprint(th) <= budget_bytes:
            return th
        fallback = th
    return fallback


def trconvolution_forward(x_nchw, weight, gamma, beta, run_mean, run_var,
                          eps=1e-5, tile_h=None):
    """x_nchw: (N, Cin, H, W) f32; weight: (Cin, Cout, 4, 4) (PyTorch layout)."""
    N, Cin, H, W = x_nchw.shape
    Cout = weight.shape[1]
    # Pad Cout to a multiple of 32 so the 4 concatenated phase slabs fill a
    # multiple of 128 lanes (unmasked stores); padded channels stay zero
    # (zero weight columns + zero shift) and are sliced off in the wrapper.
    Cpad = ((Cout + 31) // 32) * 32

    # bf16 activations: halves input DMA and every in-kernel slab / LHS.
    x = jnp.transpose(x_nchw, (0, 2, 3, 1)).astype(jnp.bfloat16)   # NHWC

    # Fold BN scale into the weights (inference-mode BN).
    scale = (gamma / jnp.sqrt(run_var + eps)).astype(jnp.float32)
    shift = (beta - run_mean * scale).astype(jnp.float32)
    wsc = weight.astype(jnp.float32) * scale[None, :, None, None]

    # Merged tap packing: rows = 9 distinct shifted windows (dh, dw), columns
    # = 4 output phases; (window, phase) pairs a phase does not use stay zero.
    rhs = jnp.zeros((9 * Cin, 4 * Cpad), jnp.float32)
    for r in range(2):
        for s in range(2):
            p = 2 * r + s
            for (dh, kh) in _PAIRS[r]:
                for (dw, kw) in _PAIRS[s]:
                    w9 = (dh + 1) * 3 + (dw + 1)
                    rhs = rhs.at[w9 * Cin:(w9 + 1) * Cin,
                                 p * Cpad:p * Cpad + Cout].set(wsc[:, :, kh, kw])
    rhs = rhs.astype(jnp.bfloat16)
    shift_packed = jnp.tile(jnp.pad(shift, (0, Cpad - Cout)), 4).reshape(1, 4 * Cpad)

    vmem_limit = _vmem_limit_bytes()
    TH = tile_h if tile_h is not None else _pick_tile_h(
        H, W, Cin, Cpad, (3 * vmem_limit) // 5)
    assert H % TH == 0 and (TH == H or (TH * W) % 8 == 0), (H, W, TH)
    HT = H // TH

    flops = 2 * N * (H * W) * (9 * Cin) * (4 * Cpad)
    bytes_accessed = int(x.size * 2 + rhs.size * 2 + shift_packed.size * 4
                         + 2 * N * HT * W * Cin * 2          # halo rows
                         + N * (H * W) * 4 * Cpad * 2)       # bf16 output

    out = pl.pallas_call(
        _trconv_kernel,
        out_shape=jax.ShapeDtypeStruct((N, H * W, 4 * Cpad), jnp.bfloat16),
        grid_spec=pltpu.PrefetchScalarGridSpec(
            num_scalar_prefetch=0,
            grid=(N, HT),
            in_specs=[
                pl.BlockSpec((1, TH, W, Cin), lambda n, h: (n, h, 0, 0)),
                pl.BlockSpec((1, 1, W, Cin),
                             lambda n, h: (n, jnp.maximum(h * TH - 1, 0), 0, 0)),
                pl.BlockSpec((1, 1, W, Cin),
                             lambda n, h: (n, jnp.minimum((h + 1) * TH, H - 1), 0, 0)),
                pl.BlockSpec((9 * Cin, 4 * Cpad), lambda n, h: (0, 0)),
                pl.BlockSpec((1, 4 * Cpad), lambda n, h: (0, 0)),
            ],
            out_specs=pl.BlockSpec((1, TH * W, 4 * Cpad), lambda n, h: (n, h, 0)),
            scratch_shapes=[pltpu.VMEM((TH + 2, W + 2, Cin), jnp.bfloat16)],
        ),
        compiler_params=pltpu.CompilerParams(
            dimension_semantics=("parallel", "parallel"),
            vmem_limit_bytes=vmem_limit),
        cost_estimate=pl.CostEstimate(flops=flops, transcendentals=0,
                                      bytes_accessed=bytes_accessed),
    )(x, x, x, rhs, shift_packed)

    # (N, H*W, 4*Cpad) -> (N, H, W, r, s, C); slice the padded channels BEFORE
    # the transpose; phase interleave + NHWC->NCHW compose into one transpose,
    # then a free reshape merges (H, r) -> 2H and (W, s) -> 2W.
    out = out.reshape(N, H, W, 2, 2, Cpad)[..., :Cout]
    out = jnp.transpose(out, (0, 5, 1, 3, 2, 4)).reshape(N, Cout, 2 * H, 2 * W)
    return out.astype(jnp.float32)


def reference_forward(x, weight, gamma, beta, mean, var, eps=1e-5):
    """Pure-JAX reference: ConvTranspose2d(k=4,s=2,p=1) + inference BN + ReLU."""
    w_flip = jnp.transpose(weight, (1, 0, 2, 3))[:, :, ::-1, ::-1]
    y = jax.lax.conv_general_dilated(
        x, w_flip, window_strides=(1, 1), padding=((2, 2), (2, 2)),
        lhs_dilation=(2, 2), dimension_numbers=("NCHW", "OIHW", "NCHW"))
    scale = gamma / jnp.sqrt(var + eps)
    shift = beta - mean * scale
    y = y * scale[None, :, None, None] + shift[None, :, None, None]
    return jnp.maximum(y, 0.0)


if __name__ == "__main__":
    N, Cin, Cout, H, W = 2, 4, 8, 16, 16

    key = jax.random.PRNGKey(0)
    k_x, k_w, k_g, k_b, k_m, k_v = jax.random.split(key, 6)

    x = jax.random.normal(k_x, (N, Cin, H, W), dtype=jnp.float32)
    # ConvTranspose2d weight layout: (in_dim, out_dim, kH, kW)
    weight = jax.random.normal(k_w, (Cin, Cout, 4, 4), dtype=jnp.float32) * 0.1
    gamma = jax.random.normal(k_g, (Cout,), dtype=jnp.float32) * 0.1 + 1.0
    beta = jax.random.normal(k_b, (Cout,), dtype=jnp.float32) * 0.1
    run_mean = jax.random.normal(k_m, (Cout,), dtype=jnp.float32) * 0.1
    run_var = jnp.abs(jax.random.normal(k_v, (Cout,), dtype=jnp.float32)) + 0.5

    ref = jax.block_until_ready(
        reference_forward(x, weight, gamma, beta, run_mean, run_var))

    # 1) H-tiled path (tile_h=8 -> grid (N, 2)): exercises the cross-tile halo.
    out_tiled = jax.block_until_ready(
        trconvolution_forward(x, weight, gamma, beta, run_mean, run_var, tile_h=8))
    # 2) Auto-picked tiling (whole image per step at this size).
    out_auto = jax.block_until_ready(
        trconvolution_forward(x, weight, gamma, beta, run_mean, run_var))

    assert out_tiled.shape == (N, Cout, 2 * H, 2 * W), out_tiled.shape
    assert out_auto.shape == (N, Cout, 2 * H, 2 * W), out_auto.shape
    # bf16 activations/weights/outputs (f32 accumulation) vs f32 reference.
    np.testing.assert_allclose(np.asarray(out_tiled), np.asarray(ref),
                               rtol=3e-2, atol=3e-2)
    np.testing.assert_allclose(np.asarray(out_auto), np.asarray(ref),
                               rtol=3e-2, atol=3e-2)
    print("KERNEL_OK")
</pallas_src>

<mosaic_0001>
module attributes {stable_mosaic.version = 11 : i64} {
  func.func @_trconv_kernel(%arg0: i32, %arg1: i32, %arg2: memref<1x8x16x4xbf16, #tpu.memory_space<vmem>>, %arg3: memref<1x1x16x4xbf16, #tpu.memory_space<vmem>>, %arg4: memref<1x1x16x4xbf16, #tpu.memory_space<vmem>>, %arg5: memref<36x128xbf16, #tpu.memory_space<vmem>>, %arg6: memref<1x128xf32, #tpu.memory_space<vmem>>, %arg7: memref<1x128x128xbf16, #tpu.memory_space<vmem>>, %arg8: memref<10x18x4xbf16, #tpu.memory_space<vmem>>) attributes {dimension_semantics = [#tpu.dimension_semantics<parallel>, #tpu.dimension_semantics<parallel>], iteration_bounds = array<i64: 2, 2>, scalar_prefetch = 0 : i64, scratch_operands = 1 : i64, tpu.core_type = #tpu.core_type<tc>, window_params = [{transform_indices = @transform_0, window_bounds = array<i64: 1, 8, 16, 4>}, {transform_indices = @transform_1, window_bounds = array<i64: 1, 1, 16, 4>}, {transform_indices = @transform_2, window_bounds = array<i64: 1, 1, 16, 4>}, {pipeline_mode = #tpu.pipeline_mode<synchronous>, transform_indices = @transform_3, window_bounds = array<i64: 36, 128>}, {pipeline_mode = #tpu.pipeline_mode<synchronous>, transform_indices = @transform_4, window_bounds = array<i64: 1, 128>}, {transform_indices = @transform_5, window_bounds = array<i64: 1, 128, 128>}]} {
    %cst = arith.constant 0.000000e+00 : bf16
    %0 = vector.broadcast %cst : bf16 to vector<1x16x4xbf16>
    %c0_i32 = arith.constant 0 : i32
    %1 = arith.cmpi sgt, %arg1, %c0_i32 : i32
    %c0 = arith.constant 0 : index
    %c0_0 = arith.constant 0 : index
    %c0_1 = arith.constant 0 : index
    %c0_2 = arith.constant 0 : index
    %2 = vector.load %arg3[%c0, %c0_0, %c0_1, %c0_2] : memref<1x1x16x4xbf16, #tpu.memory_space<vmem>>, vector<1x1x16x4xbf16>
    %3 = vector.shape_cast %2 : vector<1x1x16x4xbf16> to vector<1x16x4xbf16>
    %4 = arith.select %1, %3, %0 : vector<1x16x4xbf16>
    %c0_3 = arith.constant 0 : index
    %c1 = arith.constant 1 : index
    %c0_4 = arith.constant 0 : index
    %5 = vector.load %arg8[%c0_3, %c1, %c0_4] : memref<10x18x4xbf16, #tpu.memory_space<vmem>>, vector<1x16x4xbf16>
    tpu.vector_store %arg8[%c0_3, %c1, %c0_4], %4 {strides = array<i32>} : memref<10x18x4xbf16, #tpu.memory_space<vmem>>, vector<1x16x4xbf16>,
    %c0_5 = arith.constant 0 : index
    %c0_6 = arith.constant 0 : index
    %c0_7 = arith.constant 0 : index
    %c0_8 = arith.constant 0 : index
    %6 = vector.load %arg2[%c0_5, %c0_6, %c0_7, %c0_8] : memref<1x8x16x4xbf16, #tpu.memory_space<vmem>>, vector<1x8x16x4xbf16>
    %7 = vector.shape_cast %6 : vector<1x8x16x4xbf16> to vector<8x16x4xbf16>
    %c1_9 = arith.constant 1 : index
    %c1_10 = arith.constant 1 : index
    %c0_11 = arith.constant 0 : index
    %8 = vector.load %arg8[%c1_9, %c1_10, %c0_11] : memref<10x18x4xbf16, #tpu.memory_space<vmem>>, vector<8x16x4xbf16>
    tpu.vector_store %arg8[%c1_9, %c1_10, %c0_11], %7 {strides = array<i32>} : memref<10x18x4xbf16, #tpu.memory_space<vmem>>, vector<8x16x4xbf16>,
    %c1_i32 = arith.constant 1 : i32
    %9 = arith.cmpi slt, %arg1, %c1_i32 : i32
    %c0_12 = arith.constant 0 : index
    %c0_13 = arith.constant 0 : index
    %c0_14 = arith.constant 0 : index
    %c0_15 = arith.constant 0 : index
    %10 = vector.load %arg4[%c0_12, %c0_13, %c0_14, %c0_15] : memref<1x1x16x4xbf16, #tpu.memory_space<vmem>>, vector<1x1x16x4xbf16>
    %11 = vector.shape_cast %10 : vector<1x1x16x4xbf16> to vector<1x16x4xbf16>
    %12 = arith.select %9, %11, %0 : vector<1x16x4xbf16>
    %c9 = arith.constant 9 : index
    %c1_16 = arith.constant 1 : index
    %c0_17 = arith.constant 0 : index
    %13 = vector.load %arg8[%c9, %c1_16, %c0_17] : memref<10x18x4xbf16, #tpu.memory_space<vmem>>, vector<1x16x4xbf16>
    tpu.vector_store %arg8[%c9, %c1_16, %c0_17], %12 {strides = array<i32>} : memref<10x18x4xbf16, #tpu.memory_space<vmem>>, vector<1x16x4xbf16>,
    %cst_18 = arith.constant 0.000000e+00 : bf16
    %14 = vector.broadcast %cst_18 : bf16 to vector<10x1x4xbf16>
    %c0_19 = arith.constant 0 : index
    %c0_20 = arith.constant 0 : index
    %c0_21 = arith.constant 0 : index
    %15 = vector.load %arg8[%c0_19, %c0_20, %c0_21] : memref<10x18x4xbf16, #tpu.memory_space<vmem>>, vector<10x1x4xbf16>
    tpu.vector_store %arg8[%c0_19, %c0_20, %c0_21], %14 {strides = array<i32>} : memref<10x18x4xbf16, #tpu.memory_space<vmem>>, vector<10x1x4xbf16>,
    %c0_22 = arith.constant 0 : index
    %c17 = arith.constant 17 : index
    %c0_23 = arith.constant 0 : index
    %16 = vector.load %arg8[%c0_22, %c17, %c0_23] : memref<10x18x4xbf16, #tpu.memory_space<vmem>>, vector<10x1x4xbf16>
    tpu.vector_store %arg8[%c0_22, %c17, %c0_23], %14 {strides = array<i32>} : memref<10x18x4xbf16, #tpu.memory_space<vmem>>, vector<10x1x4xbf16>,
    %c0_24 = arith.constant 0 : index
    %c0_25 = arith.constant 0 : index
    %c0_26 = arith.constant 0 : index
    %17 = vector.load %arg8[%c0_24, %c0_25, %c0_26] : memref<10x18x4xbf16, #tpu.memory_space<vmem>>, vector<10x16x4xbf16>
    %18 = vector.shape_cast %17 : vector<10x16x4xbf16> to vector<160x4xbf16>
    %c0_27 = arith.constant 0 : index
    %c1_28 = arith.constant 1 : index
    %c0_29 = arith.constant 0 : index
    %19 = vector.load %arg8[%c0_27, %c1_28, %c0_29] : memref<10x18x4xbf16, #tpu.memory_space<vmem>>, vector<10x16x4xbf16>
    %20 = vector.shape_cast %19 : vector<10x16x4xbf16> to vector<160x4xbf16>
    %c0_30 = arith.constant 0 : index
    %c2 = arith.constant 2 : index
    %c0_31 = arith.constant 0 : index
    %21 = vector.load %arg8[%c0_30, %c2, %c0_31] : memref<10x18x4xbf16, #tpu.memory_space<vmem>>, vector<10x16x4xbf16>
    %22 = vector.shape_cast %21 : vector<10x16x4xbf16> to vector<160x4xbf16>
    %23 = vector.extract_strided_slice %18 {offsets = [0, 0], sizes = [128, 4], strides = [1, 1]} : vector<160x4xbf16> to vector<128x4xbf16>
    %24 = vector.extract_strided_slice %20 {offsets = [0, 0], sizes = [128, 4], strides = [1, 1]} : vector<160x4xbf16> to vector<128x4xbf16>
    %25 = vector.extract_strided_slice %22 {offsets = [0, 0], sizes = [128, 4], strides = [1, 1]} : vector<160x4xbf16> to vector<128x4xbf16>
    %26 = vector.extract_strided_slice %18 {offsets = [16, 0], sizes = [128, 4], strides = [1, 1]} : vector<160x4xbf16> to vector<128x4xbf16>
    %27 = vector.extract_strided_slice %20 {offsets = [16, 0], sizes = [128, 4], strides = [1, 1]} : vector<160x4xbf16> to vector<128x4xbf16>
    %28 = vector.extract_strided_slice %22 {offsets = [16, 0], sizes = [128, 4], strides = [1, 1]} : vector<160x4xbf16> to vector<128x4xbf16>
    %29 = vector.extract_strided_slice %18 {offsets = [32, 0], sizes = [128, 4], strides = [1, 1]} : vector<160x4xbf16> to vector<128x4xbf16>
    %30 = vector.extract_strided_slice %20 {offsets = [32, 0], sizes = [128, 4], strides = [1, 1]} : vector<160x4xbf16> to vector<128x4xbf16>
    %31 = vector.extract_strided_slice %22 {offsets = [32, 0], sizes = [128, 4], strides = [1, 1]} : vector<160x4xbf16> to vector<128x4xbf16>
    %32 = tpu.concatenate %23, %24, %25, %26, %27, %28, %29, %30, %31 in 1 : vector<128x4xbf16>, vector<128x4xbf16>, vector<128x4xbf16>, vector<128x4xbf16>, vector<128x4xbf16>, vector<128x4xbf16>, vector<128x4xbf16>, vector<128x4xbf16>, vector<128x4xbf16> -> vector<128x36xbf16>
    %c0_32 = arith.constant 0 : index
    %c0_33 = arith.constant 0 : index
    %33 = vector.load %arg5[%c0_32, %c0_33] : memref<36x128xbf16, #tpu.memory_space<vmem>>, vector<36x128xbf16>
    %cst_34 = arith.constant dense<0.000000e+00> : vector<128x128xf32>
    %34 = tpu.matmul %32, %33, %cst_34 {dimension_numbers = #tpu.dot_dimension_numbers<[1], [0], [0], [1], [0, 0, 1, 1], [], []>} : vector<128x36xbf16>, vector<36x128xbf16>, vector<128x128xf32> -> vector<128x128xf32>
    %c0_35 = arith.constant 0 : index
    %c0_36 = arith.constant 0 : index
    %35 = vector.load %arg6[%c0_35, %c0_36] : memref<1x128xf32, #tpu.memory_space<vmem>>, vector<1x128xf32>
    %36 = vector.broadcast %35 : vector<1x128xf32> to vector<128x128xf32>
    %37 = arith.addf %34, %36 : vector<128x128xf32>
    %cst_37 = arith.constant 0.000000e+00 : f32
    %38 = vector.broadcast %cst_37 : f32 to vector<128x128xf32>
    %39 = arith.maximumf %37, %38 : vector<128x128xf32>
    %40 = arith.truncf %39 : vector<128x128xf32> to vector<128x128xbf16>
    %c0_38 = arith.constant 0 : index
    %c0_39 = arith.constant 0 : index
    %c0_40 = arith.constant 0 : index
    %41 = vector.load %arg7[%c0_38, %c0_39, %c0_40] : memref<1x128x128xbf16, #tpu.memory_space<vmem>>, vector<1x128x128xbf16>
    %42 = vector.shape_cast %41 : vector<1x128x128xbf16> to vector<128x128xbf16>
    %43 = vector.shape_cast %40 : vector<128x128xbf16> to vector<1x128x128xbf16>
    tpu.vector_store %arg7[%c0_38, %c0_39, %c0_40], %43 {strides = array<i32>} : memref<1x128x128xbf16, #tpu.memory_space<vmem>>, vector<1x128x128xbf16>,
    return
  }
  func.func @transform_0(%arg0: i32, %arg1: i32) -> (i32, i32, i32, i32) {
    %c0_i32 = arith.constant 0 : i32
    %c0_i32_0 = arith.constant 0 : i32
    %c0_i32_1 = arith.constant 0 : i32
    return %arg0, %arg1, %c0_i32, %c0_i32_0 : i32, i32, i32, i32
  }
  func.func @transform_1(%arg0: i32, %arg1: i32) -> (i32, i32, i32, i32) {
    %c8_i32 = arith.constant 8 : i32
    %0 = arith.muli %arg1, %c8_i32 : i32
    %c1_i32 = arith.constant 1 : i32
    %1 = arith.subi %0, %c1_i32 : i32
    %c0_i32 = arith.constant 0 : i32
    %2 = arith.maxsi %1, %c0_i32 : i32
    %c0_i32_0 = arith.constant 0 : i32
    %c0_i32_1 = arith.constant 0 : i32
    %c0_i32_2 = arith.constant 0 : i32
    return %arg0, %2, %c0_i32_0, %c0_i32_1 : i32, i32, i32, i32
  }
  func.func @transform_2(%arg0: i32, %arg1: i32) -> (i32, i32, i32, i32) {
    %c1_i32 = arith.constant 1 : i32
    %0 = arith.addi %arg1, %c1_i32 : i32
    %c8_i32 = arith.constant 8 : i32
    %1 = arith.muli %0, %c8_i32 : i32
    %c15_i32 = arith.constant 15 : i32
    %2 = arith.minsi %1, %c15_i32 : i32
    %c0_i32 = arith.constant 0 : i32
    %c0_i32_0 = arith.constant 0 : i32
    %c0_i32_1 = arith.constant 0 : i32
    return %arg0, %2, %c0_i32, %c0_i32_0 : i32, i32, i32, i32
  }
  func.func @transform_3(%arg0: i32, %arg1: i32) -> (i32, i32) {
    %c0_i32 = arith.constant 0 : i32
    %c0_i32_0 = arith.constant 0 : i32
    %c0_i32_1 = arith.constant 0 : i32
    return %c0_i32, %c0_i32_0 : i32, i32
  }
  func.func @transform_4(%arg0: i32, %arg1: i32) -> (i32, i32) {
    %c0_i32 = arith.constant 0 : i32
    %c0_i32_0 = arith.constant 0 : i32
    %c0_i32_1 = arith.constant 0 : i32
    return %c0_i32, %c0_i32_0 : i32, i32
  }
  func.func @transform_5(%arg0: i32, %arg1: i32) -> (i32, i32, i32) {
    %c0_i32 = arith.constant 0 : i32
    %c0_i32_0 = arith.constant 0 : i32
    return %arg0, %arg1, %c0_i32 : i32, i32, i32
  }
}

</mosaic_0001>

<bundles_post_ra>
// kernel: tpu_custom_call.1
= control target key start
LH: loop header
LB: loop body
LE: loop exit
PB: predicated region body
PF: predicated region fallthrough
CT: control target
= control target key end

     0   :  { %s3966_s0 = inlined_call_operand.hbm [shape: bf16[2,16,16,4], index: 0, kind: input, shape index: {}]   ;;  %s3967_s1 = inlined_call_operand.hbm [shape: bf16[2,16,16,4], index: 1, kind: input, shape index: {}]   ;;  %s3968_s2 = inlined_call_operand.hbm [shape: bf16[2,16,16,4], index: 2, kind: input, shape index: {}]   ;;  %s3969_s3 = inlined_call_operand.hbm [shape: bf16[36,128], index: 3, kind: input, shape index: {}]   ;;  %s3970_s4 = inlined_call_operand.hbm [shape: f32[1,128], index: 4, kind: input, shape index: {}]   ;;  %s3971_s5 = inlined_call_operand.hbm [shape: bf16[2,256,128], index: 5, kind: output, shape index: {}]  }
   0x1   :  { %3998 = sst [smem:[#allocation31_spill]] %s3966_s0 }
   0x2   :  { %3999 = sst [smem:[#allocation32_spill]] %s3967_s1 }
   0x3   :  { %4000 = sst [smem:[#allocation33_spill]] %s3968_s2 }
   0x4   :  { %4001 = sst [smem:[#allocation34_spill]] %s3969_s3 }
   0x5   :  { %4002 = sst [smem:[#allocation35_spill]] %s3970_s4 }
   0x6   :  { %4003 = sst [smem:[#allocation36_spill]] %s3971_s5 }
   0x7   :  { %10 = vsyncpa [#allocation4], 0 }
   0x8   :  { %12 = vsyncpa [#allocation4 + $0x1], 0 }
   0x9   :  { %13 = vsyncpa [#allocation7], 0 }
   0xa   :  { %15 = vsyncpa [#allocation7 + $0x1], 0 }
   0xb   :  { %16 = vsyncpa [#allocation10], 0 }
   0xc   :  { %17 = vsyncpa [#allocation5], 0 }
   0xd   :  { %19 = vsyncpa [#allocation5 + $0x1], 0  ;;  %s2708_s18 = smov 0   ;;  %s2710_s19 = smov 0  }
   0xe   :  { %s2712_s20 = smov 0   ;;  %s2714_s21 = smov 0  }
   0xf   :  { %s2716_s22 = smov 0   ;;  %s2718_s23 = smov 0  }
  0x10   :  { %s2720_s24 = smov 0   ;;  %s2722_s25 = smov 0  }
  0x11   :  { %s2724_s26 = smov 0   ;;  %s2726_s27 = smov 0  }
  0x12   :  { %s2728_s28 = smov 0   ;;  %s2730_s29 = smov 0  }
  0x13   :  { %s2732_s30 = smov 0   ;;  %s2734_s6 = smov 0  }
  0x14 LB: > { %4004 = sst [smem:[#allocation18_spill]] %s2607_s18  ;;  %s2779_s7 = sadd.s32 4294967295, %s2659_s6   ;;  %s2659_s6 = sphi %s2734_s6, %s25_s6   ;;  %s2655_s30 = sphi %s2732_s30, %s4092_s30   ;;  %s2651_s29 = sphi %s2730_s29, %s4091_s29   ;;  %s2647_s28 = sphi %s2728_s28, %s4100_s28   ;;  %s2643_s27 = sphi %s2726_s27, %s4089_s27   ;;  %s2639_s26 = sphi %s2724_s26, %s4099_s26   ;;  %s2635_s25 = sphi %s2722_s25, %s4098_s25   ;;  %s2631_s24 = sphi %s2720_s24, %s4097_s24   ;;  %s2627_s23 = sphi %s2718_s23, %s4096_s23   ;;  %s2623_s22 = sphi %s2716_s22, %s4095_s22   ;;  %s2619_s21 = sphi %s2714_s21, %s4094_s21   ;;  %s2615_s20 = sphi %s2712_s20, %s4093_s20   ;;  %s2611_s19 = sphi %s2710_s19, %s4086_s19   ;;  %s2607_s18 = sphi %s2708_s18, %s4085_s18  }
  0x15   : > { %4005 = sst [smem:[#allocation19_spill]] %s2611_s19  ;;  %p1964_p0 = scmp.ge.s32.totalorder %s2659_s6, 1 }
  0x16   : > { %4006 = sst [smem:[#allocation20_spill]] %s2615_s20  ;;  %p3972_p1 = scmp.eq.s32.totalorder %s2779_s7, 0 }
  0x17   : > { %4007 = sst [smem:[#allocation21_spill]] %s2623_s22  ;;  %p212_p3 = scmp.lt.s32.totalorder %s2659_s6, 5 }
  0x18   : > { %4008 = sst [smem:[#allocation22_spill]] %s2643_s27  ;;  %s2661_s9 = smov [#allocation9]  }
  0x19   : > { %4009 = sst [smem:[#allocation23_spill]] %s2647_s28  ;;  %p2785_p4 = pnand %p1964_p0, %p212_p3 }
  0x1a   : > { %4010 = sst [smem:[#allocation24_spill]] %s2651_s29  ;;  %s224_s10 = sshll.u32 %s2661_s9, 4  ;;  %s225_s10 = int_to_ptr.vmem [resolvable:$true] %s224_s10 }
  0x1b   : > { %4011 = sst [smem:[#allocation25_spill]] %s2655_s30  ;;  %p2192_p5 = pneg %p2785_p4 }
  0x1c   : > { %s4012_s8 = scalar_select %p2785_p4, 1, 0 }
  0x1d   : > { %p2793_p6 = pnand %p2192_p5, %p3972_p1  ;;  %s4015_s3 = sld [smem:[#allocation34_spill]] }
  0x1e   : > { %4013 = sst [smem:[#allocation26_spill]] %s4012_s8 }
  0x1f   : > { %p3992_p8 = pneg %p2793_p6 }
  0x23   : > { %s2355_s14 = scalar_lea.hbm %s4015_s3, 320 }
  0x24   : > { %p2356_p7 = scmp.ne.s32.totalorder %s4015_s3, %s2355_s14  ;;  %p2362_p11 = scmp.lt.u32.totalorder %s2355_s14, %s4015_s3 }
  0x26   : > { %p2358_p9 = pnand %p3992_p8, %p2356_p7 }
  0x28   : > { %p2359_p10 = pneg %p2358_p9 }
  0x2a   : > { %p2364_p12 = pnand %p2362_p11, %p2359_p10 }
  0x2c   : > { %2367 = shalt.err (!%p2364_p12)
}
  0x2d   : > { %s2368_s12 = scalar_lea.vmem %s225_s10, 320  ;;  %p2376_p5 = scmp.lt.s32.totalorder %s225_s10, %s225_s10 }
  0x2e   : > { %p2369_p13 = scmp.ne.s32.totalorder %s225_s10, %s2368_s12  ;;  %p2377_p2 = scmp.lt.s32.totalorder %s2368_s12, %s2368_s12 }
  0x30   : > { %p2371_p0 = pnand %p2369_p13, %p3992_p8  ;;  %p2378_p1 = por %p2377_p2, %p2376_p5 }
  0x32   : > { %p2372_p3 = pneg %p2371_p0 }
  0x34   : > { %p2379_p4 = pnand %p2378_p1, %p2372_p3 }
  0x36   : > { %2382 = shalt.err (!%p2379_p4)
}
  0x37   : > { %s3976_s13 = smov 64   ;;  %s3978_s14 = smov 4  }
  0x38   : > { %2195 = dma.hbm_to_vmem [thread:$0]  (!%p2793_p6), %s4015_s3, 320, %s225_s10, [#allocation10], %s3976_s13, %s3976_s13, %s3978_s14  }
  0x39   : > { %s34_s17 = sadd.s32 1, %s2651_s29  ;;  %s37_s9 = sadd.s32 1, %s2655_s30 }
  0x3a   : > { %p35_p1 = scmp.ge.s32.totalorder %s34_s17, 2  ;;  %p3991_p2 = scmp.eq.s32.totalorder %s2659_s6, 0 }
  0x3b   : > { %s1958_s12 = sshll.u32 %s2651_s29, 3  ;;  %s82_s5 = sadd.s32 1, %s2627_s23 }
  0x3c   : > { %s4102_s17 = smov (%p35_p1, %s34_s17), 0  ;;  %s4104_s9 = smov (!%p35_p1, %s37_s9), %s2655_s30 }
  0x3d   : > { %4016 = sst [smem:[#allocation27_spill]] %s4102_s17  ;;  %s42_s28 = ssub.s32 %s2651_s29, %s4102_s17 }
  0x3e   : > { %s1959_s27 = sadd.s32 4294967295, %s1958_s12  ;;  %p39_p4 = scmp.ge.s32.totalorder %s4104_s9, 2 }
  0x3f   : > { %p71_p7 = scmp.gt.s32.totalorder %s1959_s27, 0  ;;  %s1960_s10 = sshll.u32 %s4102_s17, 3 }
  0x40   : > { %p89_p9 = scmp.ne.s32.totalorder %s2627_s23, %s2623_s22  ;;  %s4106_s9 = smov (%p39_p4, %s4104_s9), 0 }
  0x41   : > { %4017 = sst [smem:[#allocation28_spill]] %s4106_s9  ;;  %s4108_s27 = smov (!%p71_p7, %s1959_s27), 0 }
  0x42   : > { %s2839_s15 = ssub.s32 %s2655_s30, %s4106_s9  ;;  %s1961_s16 = sadd.s32 4294967295, %s1960_s10 }
  0x43   : > { %4018 = sst [smem:[#allocation29_spill]] %s2839_s15  ;;  %s2842_s13 = sor.u32 %s42_s28, %s2839_s15 }
  0x44   : > { %p75_p10 = scmp.gt.s32.totalorder %s1961_s16, 0  ;;  %p2847_p12 = por %p89_p9, %p3991_p2 }
  0x45   : > { %p95_p13 = scmp.ne.s32.totalorder %s2623_s22, %s2619_s21  ;;  %s2853_s3 = sadd.s32 8, %s1958_s12 }
  0x46   : > { %s4110_s16 = smov (!%p75_p10, %s1961_s16), 0  ;;  %p4020_p3 = scmp.eq.s32.totalorder %s2779_s7, 0 }
  0x47   : > { %s78_s9 = ssub.s32 %s4108_s27, %s4110_s16  ;;  %s2863_s8 = sadd.s32 8, %s1960_s10 }
  0x48   : > { %s79_s28 = sor.u32 %s78_s9, %s2839_s15  ;;  %p2859_p5 = por %p95_p13, %p4020_p3 }
  0x49   : > { %p80_p1 = scmp.eq.s32.totalorder %s79_s28, 0  ;;  %p3990_p7 = scmp.lt.s32.totalorder %s2659_s6, 4 }
  0x4a   : > { %s4021_s17 = scalar_select %p2859_p5, 1, 0 }
  0x4b   : > { %s2868_s21 = scalar_select %p80_p1, %s2627_s23, %s82_s5  }
  0x4c   : > { %4022 = sst [smem:[#allocation30_spill]] %s4021_s17  ;;  %s2871_s12 = sshll.u32 %s2655_s30, 5 }
  0x4d   : > { %s273_s16 = sand.u32 1, %s2659_s6   ;;  %s275_s9 = sand.u32 1, %s2627_s23  }
  0x4e   : > { %s1973_s22 = sshll.u32 %s275_s9, 3  ;;  %s1976_s2 = sshll.u32 %s4108_s27, 1 }
  0x4f   : > { %s287_s15 = sadd.s32 %s1976_s2, %s2871_s12  ;;  %s277_s17 = scalar_lea.vmem [#allocation6], %s1973_s22 }
  0x50   : > { %s1978_s18 = sshll.u32 %s287_s15, 6  ;;  %s290_s28 = sshll.u32 %s277_s17, 4  ;;  %s2881_s28 = int_to_ptr.vmem [resolvable:$true] %s290_s28 }
  0x51   : > { %s4023_s1 = sld [smem:[#allocation32_spill]]  ;;  %p2887_p9 = pnand %p3990_p7, %p2847_p12 }
  0x52   : > { %s2664_s2 = smov [#allocation11]  }
  0x53   : > { %s238_s22 = sshll.u32 %s2664_s2, 4  ;;  %p2385_p13 = pneg %p2887_p9  ;;  %s2891_s22 = int_to_ptr.vmem [resolvable:$true] %s238_s22 }
  0x57   : > { %s2879_s10 = scalar_lea.hbm %s4023_s1, %s1978_s18  ;;  %s2893_s18 = scalar_lea.sflag [#allocation7], %s273_s16 }
  0x58   : > { %s2383_s19 = scalar_lea.hbm %s2879_s10, 128  ;;  %s2388_s14 = scalar_lea.hbm %s4023_s1, 4096 }
  0x59   : > { %p2384_p10 = scmp.ne.s32.totalorder %s2879_s10, %s2383_s19  ;;  %p2389_p12 = scmp.lt.u32.totalorder %s2879_s10, %s4023_s1 }
  0x5a   : > { %p2390_p4 = scmp.lt.u32.totalorder %s2388_s14, %s2383_s19  ;;  %p2392_p7 = scmp.lt.u32.totalorder %s2383_s19, %s2879_s10 }
  0x5b   : > { %p2386_p3 = pnand %p2385_p13, %p2384_p10 }
  0x5c   : > { %p2391_p0 = por %p2390_p4, %p2389_p12 }
  0x5d   : > { %p2387_p1 = pneg %p2386_p3 }
  0x5e   : > { %p2393_p2 = por %p2392_p7, %p2391_p0 }
  0x60   : > { %p2394_p11 = pnand %p2393_p2, %p2387_p1 }
  0x62   : > { %2397 = shalt.err (!%p2394_p11)
}
  0x63   : > { %s2398_s16 = scalar_lea.vmem %s2881_s28, 128  ;;  %s2665_s9 = smov [#allocation6]  }
  0x64   : > { %p2399_p10 = scmp.ne.s32.totalorder %s2881_s28, %s2398_s16  ;;  %s2403_s2 = sshll.u32 %s2665_s9, 4  ;;  %s2404_s2 = int_to_ptr.vmem [resolvable:$false] %s2403_s2 }
  0x65   : > { %s2405_s20 = scalar_lea.vmem %s2404_s2, 256  ;;  %p2406_p5 = scmp.lt.s32.totalorder %s2881_s28, %s2404_s2 }
  0x66   : > { %p2401_p3 = pnand %p2399_p10, %p2385_p13  ;;  %p2407_p4 = scmp.lt.s32.totalorder %s2405_s20, %s2398_s16 }
  0x68   : > { %p2402_p8 = pneg %p2401_p3  ;;  %p2408_p12 = por %p2407_p4, %p2406_p5 }
  0x6a   : > { %p2409_p0 = pnand %p2408_p12, %p2402_p8 }
  0x6c   : > { %2412 = shalt.err (!%p2409_p0)
}
  0x6d   : > { %s4025_s19 = smov 4   ;;  %s4026_s27 = smov 64  }
  0x6e   : > { %2205 = dma.hbm_to_vmem [thread:$0]  (!%p2887_p9), %s2879_s10, 128, %s2881_s28, %s2893_s18, %s4026_s27, %s4026_s27, %s4025_s19  }
  0x6f   : > { %s4027_s4 = sld [smem:[#allocation35_spill]]  ;;  %p4028_p8 = pneg %p2793_p6 }
  0x75   : > { %s2413_s15 = scalar_lea.hbm %s4027_s4, 16 }
  0x76   : > { %p2414_p2 = scmp.ne.s32.totalorder %s4027_s4, %s2413_s15  ;;  %p2420_p7 = scmp.lt.u32.totalorder %s2413_s15, %s4027_s4 }
  0x78   : > { %p2416_p11 = pnand %p2414_p2, %p4028_p8 }
  0x7a   : > { %p2417_p5 = pneg %p2416_p11 }
  0x7c   : > { %p2422_p13 = pnand %p2420_p7, %p2417_p5 }
  0x7e   : > { %2425 = shalt.err (!%p2422_p13)
}
  0x7f   : > { %s2426_s28 = scalar_lea.vmem %s2891_s22, 16  ;;  %p4029_p1 = pmov %p4028_p8 }
  0x80   : > { %p2427_p9 = scmp.ne.s32.totalorder %s2891_s22, %s2426_s28  ;;  %s2433_s10 = scalar_lea.vmem %s2891_s22, 32 }
  0x81   : > { %p2434_p4 = scmp.lt.s32.totalorder %s2891_s22, %s2891_s22  ;;  %p2435_p12 = scmp.lt.s32.totalorder %s2433_s10, %s2426_s28 }
  0x82   : > { %p2429_p10 = pnand %p2427_p9, %p4029_p1 }
  0x83   : > { %p2436_p0 = por %p2435_p12, %p2434_p4 }
  0x84   : > { %p2430_p3 = pneg %p2429_p10 }
  0x86   : > { %p2437_p2 = pnand %p2436_p0, %p2430_p3 }
  0x88   : > { %2440 = shalt.err (!%p2437_p2)
}
  0x89   : > { %2198 = dma.hbm_to_vmem [thread:$0]  (!%p2793_p6), %s4027_s4, 16, %s2891_s22, [#allocation10]  }
  0x8a   : > { %s1957_s11 = sadd.s32 4294967294, %s2659_s6   ;;  %s46_s17 = sadd.s32 1, %s2639_s26 }
  0x8b   : > { %p53_p8 = scmp.ne.s32.totalorder %s2639_s26, %s2635_s25  ;;  %p4030_p11 = scmp.eq.s32.totalorder %s2842_s13, 0 }
  0x8c   : > { %p4031_p5 = scmp.eq.s32.totalorder %s2659_s6, 0  ;;  %p59_p13 = scmp.ne.s32.totalorder %s2635_s25, %s2631_s24 }
  0x8d   : > { %s2957_s15 = scalar_select %p4030_p11, %s2639_s26, %s46_s17  }
  0x8e   : > { %p2961_p7 = por %p4031_p5, %p53_p8  ;;  %p4033_p9 = scmp.eq.s32.totalorder %s2779_s7, 3 }
  0x8f   : > { %p205_p6 = scmp.eq.s32.totalorder %s1957_s11, 3  ;;  %p4035_p10 = scmp.eq.s32.totalorder %s2779_s7, 0 }
  0x90   : > { %p2969_p1 = por %p4033_p9, %p53_p8  ;;  %s249_s13 = sand.u32 1, %s2639_s26  }
  0x91   : > { %p2975_p3 = por %p4035_p10, %p59_p13  ;;  %p2980_p4 = por %p205_p6, %p59_p13 }
  0x92   : > { %s4034_s2 = scalar_select %p2969_p1, 1, 0 }
  0x93   : > { %s4037_s5 = scalar_select %p2980_p4, 1, 0 }
  0x94   : > { %s1968_s16 = sshll.u32 %s249_s13, 6  ;;  %s2069_s28 = sshll.u32 %s2651_s29, 4 }
  0x95   : > { %s260_s10 = sadd.s32 %s2069_s28, %s2871_s12  ;;  %s253_s14 = scalar_lea.vmem [#allocation3], %s1968_s16 }
  0x96   : > { %s1972_s20 = sshll.u32 %s260_s10, 6  ;;  %s263_s17 = sshll.u32 %s253_s14, 4  ;;  %s2991_s17 = int_to_ptr.vmem [resolvable:$true] %s263_s17 }
  0x97   : > { %s4038_s0 = sld [smem:[#allocation31_spill]]  ;;  %p4039_p12 = scmp.lt.s32.totalorder %s2659_s6, 4 }
  0x98   : > { %s3001_s16 = scalar_lea.sflag [#allocation4], %s249_s13 }
  0x99   : > { %p2997_p0 = pnand %p4039_p12, %p2961_p7 }
  0x9b   : > { %p2443_p8 = pneg %p2997_p0 }
  0x9d   : > { %s2989_s11 = scalar_lea.hbm %s4038_s0, %s1972_s20  ;;  %s2446_s9 = scalar_lea.hbm %s4038_s0, 4096 }
  0x9e   : > { %s2441_s28 = scalar_lea.hbm %s2989_s11, 1024  ;;  %p2447_p7 = scmp.lt.u32.totalorder %s2989_s11, %s4038_s0 }
  0x9f   : > { %p2442_p2 = scmp.ne.s32.totalorder %s2989_s11, %s2441_s28  ;;  %p2448_p13 = scmp.lt.u32.totalorder %s2446_s9, %s2441_s28 }
  0xa0   : > { %p2450_p6 = scmp.lt.u32.totalorder %s2441_s28, %s2989_s11 }
  0xa1   : > { %p2444_p11 = pnand %p2443_p8, %p2442_p2  ;;  %p2449_p9 = por %p2448_p13, %p2447_p7 }
  0xa3   : > { %p2445_p5 = pneg %p2444_p11  ;;  %p2451_p10 = por %p2450_p6, %p2449_p9 }
  0xa5   : > { %p2452_p12 = pnand %p2451_p10, %p2445_p5 }
  0xa7   : > { %2455 = shalt.err (!%p2452_p12)
}
  0xa8   : > { %s2456_s13 = scalar_lea.vmem %s2991_s17, 1024  ;;  %s2666_s14 = smov [#allocation3]  }
  0xa9   : > { %p2457_p2 = scmp.ne.s32.totalorder %s2991_s17, %s2456_s13  ;;  %s2461_s1 = sshll.u32 %s2666_s14, 4  ;;  %s2462_s1 = int_to_ptr.vmem [resolvable:$false] %s2461_s1 }
  0xaa   : > { %s2463_s4 = scalar_lea.vmem %s2462_s1, 2048  ;;  %p2464_p1 = scmp.lt.s32.totalorder %s2991_s17, %s2462_s1 }
  0xab   : > { %p2459_p11 = pnand %p2457_p2, %p2443_p8  ;;  %p2465_p7 = scmp.lt.s32.totalorder %s2463_s4, %s2456_s13 }
  0xad   : > { %p2460_p4 = pneg %p2459_p11  ;;  %p2466_p13 = por %p2465_p7, %p2464_p1 }
  0xaf   : > { %p2467_p9 = pnand %p2466_p13, %p2460_p4 }
  0xb1   : > { %2470 = shalt.err (!%p2467_p9)
}
  0xb2   : > { %s4041_s28 = sld [smem:[#allocation20_spill]]  ;;  %s4042_s9 = sld [smem:[#allocation19_spill]] }
  0xb3   : > { %s4043_s10 = sld [smem:[#allocation18_spill]]  ;;  %s4044_s20 = sld [smem:[#allocation29_spill]] }
  0xb4   : > { %2202 = dma.hbm_to_vmem [thread:$0]  (!%p2997_p0), %s2989_s11, 1024, %s2991_s17, %s3001_s16, %s4026_s27, %s4026_s27, %s4025_s19  }
  0xb5   : > { %p4045_p1 = scmp.lt.s32.totalorder %s2853_s3, 15  ;;  %p4046_p4 = scmp.lt.s32.totalorder %s2863_s8, 15 }
  0xb6   : > { %p4047_p6 = scmp.eq.s32.totalorder %s2659_s6, 0  ;;  %p4049_p2 = scmp.eq.s32.totalorder %s2779_s7, 0 }
  0xb7   : > { %s4112_s3 = smov (!%p4045_p1, %s2853_s3), 15  ;;  %s4114_s8 = smov (!%p4046_p4, %s2863_s8), 15 }
  0xb8   : > { %s118_s30 = sadd.s32 1, %s4041_s28  ;;  %p125_p8 = scmp.ne.s32.totalorder %s4041_s28, %s4042_s9 }
  0xb9   : > { %s114_s13 = ssub.s32 %s4112_s3, %s4114_s8  ;;  %p131_p5 = scmp.ne.s32.totalorder %s4042_s9, %s4043_s10 }
  0xba   : > { %s115_s14 = sor.u32 %s114_s13, %s4044_s20  ;;  %p3046_p10 = por %p125_p8, %p4047_p6 }
  0xbb   : > { %p116_p12 = scmp.eq.s32.totalorder %s115_s14, 0  ;;  %p3052_p11 = por %p131_p5, %p4049_p2 }
  0xbc   : > { %s302_s11 = sand.u32 1, %s4041_s28   ;;  %s1981_s16 = sshll.u32 %s4112_s3, 1 }
  0xbd   : > { %s4050_s17 = scalar_select %p3052_p11, 1, 0 }
  0xbe   : > { %s4116_s28 = smov (!%p116_p12, %s4041_s28), %s118_s30  ;;  %s1979_s8 = sshll.u32 %s302_s11, 3 }
  0xbf   : > { %s314_s4 = sadd.s32 %s1981_s16, %s2871_s12  ;;  %s4051_s13 = sld [smem:[#allocation33_spill]] }
  0xc0   : > { %s1983_s9 = sshll.u32 %s314_s4, 6  ;;  %s304_s14 = scalar_lea.vmem [#allocation8], %s1979_s8 }
  0xc1   : > { %s317_s29 = sshll.u32 %s304_s14, 4  ;;  %p4052_p0 = scmp.lt.s32.totalorder %s2659_s6, 4  ;;  %s3066_s29 = int_to_ptr.vmem [resolvable:$true] %s317_s29 }
  0xc3   : > { %p3072_p7 = pnand %p4052_p0, %p3046_p10 }
  0xc5   : > { %s3064_s0 = scalar_lea.hbm %s4051_s13, %s1983_s9  ;;  %p2473_p9 = pneg %p3072_p7 }
  0xc6   : > { %s2471_s12 = scalar_lea.hbm %s3064_s0, 128  ;;  %s2476_s16 = scalar_lea.hbm %s4051_s13, 4096 }
  0xc7   : > { %p2472_p13 = scmp.ne.s32.totalorder %s3064_s0, %s2471_s12  ;;  %p2477_p8 = scmp.lt.u32.totalorder %s3064_s0, %s4051_s13 }
  0xc8   : > { %p2478_p5 = scmp.lt.u32.totalorder %s2476_s16, %s2471_s12  ;;  %p2480_p10 = scmp.lt.u32.totalorder %s2471_s12, %s3064_s0 }
  0xc9   : > { %p2474_p1 = pnand %p2473_p9, %p2472_p13 }
  0xca   : > { %p2479_p6 = por %p2478_p5, %p2477_p8 }
  0xcb   : > { %p2475_p4 = pneg %p2474_p1 }
  0xcc   : > { %p2481_p12 = por %p2480_p10, %p2479_p6 }
  0xce   : > { %p2482_p2 = pnand %p2481_p12, %p2475_p4 }
  0xd0   : > { %2485 = shalt.err (!%p2482_p2)
}
  0xd1   : > { %s2486_s4 = scalar_lea.vmem %s3066_s29, 128  ;;  %s2667_s9 = smov [#allocation8]  }
  0xd2   : > { %p2487_p0 = scmp.ne.s32.totalorder %s3066_s29, %s2486_s4  ;;  %s2491_s10 = sshll.u32 %s2667_s9, 4  ;;  %s2492_s10 = int_to_ptr.vmem [resolvable:$false] %s2491_s10 }
  0xd3   : > { %s2493_s20 = scalar_lea.vmem %s2492_s10, 256  ;;  %p2494_p11 = scmp.lt.s32.totalorder %s3066_s29, %s2492_s10 }
  0xd4   : > { %p2489_p13 = pnand %p2487_p0, %p2473_p9  ;;  %p2495_p8 = scmp.lt.s32.totalorder %s2493_s20, %s2486_s4 }
  0xd6   : > { %p2490_p1 = pneg %p2489_p13  ;;  %p2496_p5 = por %p2495_p8, %p2494_p11 }
  0xd8   : > { %p2497_p6 = pnand %p2496_p5, %p2490_p1 }
  0xda   : > { %2500 = shalt.err (!%p2497_p6)
}
  0xdb   : > { %2208 = dma.hbm_to_vmem [thread:$0]  (!%p3072_p7), %s3064_s0, 128, %s3066_s29, %s2893_s18, %s4026_s27, %s4026_s27, %s4025_s19  }
  0xdc   : > { %s4054_s14 = sld [smem:[#allocation26_spill]] }
  0xe2   : > { %p4055_p9 = scmp.ne.s32.totalorder %s4054_s14, 0 }
  0xe3   : > { %s3108_s12 = sand.u32 (!%p4055_p9), 1, %s2635_s25  }
  0xe4   : > { %329 = sbr.rel (%p4055_p9) target bundleno = 785 (0x311), region = 40  ;;  %s1985_s30 = sshll.u32 (!%p4055_p9), %s3108_s12, 6 }
  0xe5   : > { %s332_s11 = scalar_lea.sflag (!%p4055_p9), [#allocation4], %s3108_s12  ;;  %s3114_s3 = scalar_lea.vmem (!%p4055_p9), [#allocation3], %s1985_s30 }
  0xeb   : > { %2586 = dma.done.wait (%p2975_p3), %s332_s11, 1024  }
  0xec   : > { %2588 = vsyncadd (%p2975_p3), %s332_s11, 4294966272  ;;  %s4056_s0 = sld [smem:[#allocation21_spill]]  ;;  %s4057_s29 = sld [smem:[#allocation30_spill]] }
  0xed   : > { %s340_s18 = sand.u32 1, %s2779_s7  }
  0xee   : > { %s341_s16 = scalar_lea.sflag [#allocation7], %s340_s18 }
  0xf2   : > { %s342_s19 = sand.u32 1, %s4056_s0   ;;  %p4058_p11 = scmp.ne.s32.totalorder %s4057_s29, 0 }
  0xf3   : > { %s3122_s27 = sshll.u32 %s342_s19, 3 }
  0xf4   : > { %s344_s1 = scalar_lea.vmem [#allocation6], %s3122_s27 }
  0xf5   : > { %2590 = dma.done.wait (%p4058_p11), %s341_s16, 128  }
  0xf6   : > { %2592 = vsyncadd (%p4058_p11), %s341_s16, 4294967168  ;;  %s4059_s8 = sld [smem:[#allocation19_spill]]  ;;  %p4060_p3 = scmp.ne.s32.totalorder %s4050_s17, 0 }
  0xfc   : > { %s351_s4 = sand.u32 1, %s4059_s8  }
  0xfd   : > { %s3130_s22 = sshll.u32 %s351_s4, 3 }
  0xfe   : > { %s353_s9 = scalar_lea.vmem [#allocation8], %s3130_s22 }
  0xff   : > { %2594 = dma.done.wait (%p4060_p3), %s341_s16, 128  }
 0x100   : > { %2596 = vsyncadd (%p4060_p3), %s341_s16, 4294967168  ;;  %p4061_p7 = scmp.eq.s32.totalorder %s2779_s7, 0 }
 0x102   : > { %2598 = dma.done.wait (%p4061_p7), [#allocation10], 336   ;;  %p4062_p4 = pmov %p4061_p7 }
 0x103   : > { %s4063_s10 = sld [smem:[#allocation22_spill]]  ;;  %vm417_vm0 = vsmask.f32 256  ;;  %vm418_vm1 = vsmask.f32 4368  ;;  %vm440_vm3 = vcmask 27648  }
 0x104   : > { %2600 = vsyncadd (%p4062_p4), [#allocation10], 4294966960  ;;  %vm441_vm2 = vsmask.f32 7938  ;;  %v461_v0 = vld [vmem:[%s3114_s3 + $0x20] sm:$0xf] }
 0x105   : > { %v462_v1 = vld [vmem:[%s3114_s3 + $0x24] sm:$0xf]  ;;  %v538_v2 = vshrl.u32 %v461_v0, 16  ;;  %v541_v3 = vshll.u32 %v461_v0, 16  ;;  %v453_v6 = vld [vmem:[%s3114_s3] sm:$0xf]  ;;  %vm3148_vm4 = vmor %vm417_vm0, %vm418_vm1 }
 0x106   : > { %v546_v4 = vshrl.u32 %v462_v1, 16  ;;  %v549_v5 = vshll.u32 %v462_v1, 16  ;;  %v658_v7 = vld [vmem:[#allocation2 + $0x3c] sm:$0xf]  ;;  %v470_v9 = vshrl.u32 %v453_v6, 16  ;;  %v473_v10 = vshll.u32 %v453_v6, 16  ;;  %vm3157_vm6 = vmand %vm440_vm3, %vm441_vm2 }
 0x107   : > { %v454_v8 = vld [vmem:[%s3114_s3 + $0x4] sm:$0xf]  ;;  %vm448_vm5 = vcmask 24576   ;;  %v540_v12 = vrot.slane %v538_v2, 7  ;;  %v463_v15 = vld [vmem:[%s3114_s3 + $0x28] sm:$0xf] }
 0x108   : > { %v3152_v13 = vrot.slane %v546_v4, 7  ;;  %v478_v14 = vshrl.u32 %v454_v8, 16  ;;  %v472_v17 = vrot.slane %v470_v9, 7  ;;  %v481_v18 = vshll.u32 %v454_v8, 16  ;;  %v464_v19 = vld [vmem:[%s3114_s3 + $0x2c] sm:$0xf]  ;;  %vm3187_vm7 = vmand %vm448_vm5, %vm417_vm0 }
 0x109   : > { %p409_p10 = scmp.gt.s32.totalorder %s4063_s10, 0  ;;  %v555_v20 = vshrl.u32 %v463_v15, 16  ;;  %v558_v21 = vshll.u32 %v463_v15, 16  ;;  %v543_v22 = vor.u32 %v541_v3, %v540_v12  ;;  %v544_v23 = vrot.slane %v540_v12, 4  ;;  %v630_v26 = vld [vmem:[#allocation2 + $0xc] sm:$0xf]  ;;  %vm3246_vm10 = vmand %vm448_vm5, %vm441_vm2 }
 0x10a   : > { %v551_v24 = vor.u32 %v549_v5, %v3152_v13  ;;  %v553_v25 = vrot.slane %v3152_v13, 4  ;;  %v475_v27 = vor.u32 %v473_v10, %v472_v17  ;;  %v476_v28 = vrot.slane %v472_v17, 4  ;;  %v455_v31 = vld [vmem:[%s3114_s3 + $0x8] sm:$0xf]  ;;  %v665_v36 = vld [vmem:[#allocation2 + $0x48] sm:$0xf] }
 0x10b   : > { %s3166_s7 = scalar_select %p409_p10, 1, 0  ;;  %v480_v29 = vrot.slane %v478_v14, 7  ;;  %v557_v30 = vrot.slane %v555_v20, 7  ;;  %v659_v33 = vsel %vm3157_vm6, %v543_v22, %v658_v7  ;;  %v563_v34 = vshrl.u32 %v464_v19, 16 }
 0x10c   : > { %v552_v32 = vsel %vm3148_vm4, %v544_v23, %v551_v24  ;;  %v566_v35 = vshll.u32 %v464_v19, 16  ;;  %v456_v37 = vld [vmem:[%s3114_s3 + $0xc] sm:$0xf]  ;;  %660 = vst [vmem:[#allocation2 + $0x3c] sm:$0xf] %v659_v33  ;;  %v631_v40 = vsel %vm3157_vm6, %v475_v27, %v630_v26  ;;  %v487_v45 = vshrl.u32 %v455_v31, 16 }
 0x10d   : > { %661 = vst.msk [vmem:[#allocation2 + $0x40] sm:$0xf] %vm440_vm3, %v552_v32  ;;  %v483_v38 = vor.u32 %v481_v18, %v480_v29  ;;  %v485_v39 = vrot.slane %v480_v29, 4  ;;  %v560_v41 = vor.u32 %v558_v21, %v557_v30  ;;  %v459_v42 = vld [vmem:[%s3114_s3 + $0x18] sm:$0xf]  ;;  %v561_v43 = vrot.slane %v557_v30, 4 }
 0x10e   : > { %632 = vst [vmem:[#allocation2 + $0xc] sm:$0xf] %v631_v40  ;;  %v3178_v44 = vrot.slane %v563_v34, 7  ;;  %v490_v46 = vshll.u32 %v455_v31, 16  ;;  %v460_v47 = vld [vmem:[%s3114_s3 + $0x1c] sm:$0xf]  ;;  %v413_v58 = vstv %s3166_s7 }
 0x10f   : > { %v484_v48 = vsel %vm3148_vm4, %v476_v28, %v483_v38  ;;  %v666_v49 = vsel %vm3157_vm6, %v560_v41, %v665_v36  ;;  %v495_v50 = vshrl.u32 %v456_v37, 16  ;;  %v498_v51 = vshll.u32 %v456_v37, 16  ;;  %v637_v55 = vld [vmem:[#allocation2 + $0x18] sm:$0xf]  ;;  %v634_v57 = vld [vmem:[#allocation2 + $0x14] sm:$0x1] }
 0x110   : > { %633 = vst.msk [vmem:[#allocation2 + $0x10] sm:$0xf] %vm440_vm3, %v484_v48  ;;  %v568_v53 = vor.u32 %v566_v35, %v3178_v44  ;;  %667 = vst [vmem:[#allocation2 + $0x48] sm:$0xf] %v666_v49  ;;  %v489_v54 = vrot.slane %v487_v45, 7  ;;  %v521_v56 = vshrl.u32 %v459_v42, 16  ;;  %v635_v9 = vsel %vm3187_vm7, %v485_v39, %v634_v57 }
 0x111   : > { %v497_v59 = vrot.slane %v495_v50, 7  ;;  %v524_v60 = vshll.u32 %v459_v42, 16  ;;  %v529_v61 = vshrl.u32 %v460_v47, 16  ;;  %v532_v62 = vshll.u32 %v460_v47, 16  ;;  %v662_v63 = vld [vmem:[#allocation2 + $0x44] sm:$0x1] }
 0x112   : > { %v569_v0 = vsel %vm3148_vm4, %v561_v43, %v568_v53  ;;  %v492_v1 = vor.u32 %v490_v46, %v489_v54  ;;  %v493_v2 = vrot.slane %v489_v54, 4  ;;  %v523_v3 = vrot.slane %v521_v56, 7  ;;  %v651_v4 = vld [vmem:[#allocation2 + $0x30] sm:$0xf]  ;;  %v655_v8 = vld [vmem:[#allocation2 + $0x38] sm:$0x1] }
 0x113   : > { %668 = vst.msk [vmem:[#allocation2 + $0x4c] sm:$0xf] %vm440_vm3, %v569_v0  ;;  %v500_v5 = vor.u32 %v498_v51, %v497_v59  ;;  %v502_v6 = vrot.slane %v497_v59, 4  ;;  %v531_v7 = vrot.slane %v529_v61, 7  ;;  %v641_v10 = vld [vmem:[#allocation2 + $0x20] sm:$0x1]  ;;  %v663_v18 = vsel %vm3187_vm7, %v553_v25, %v662_v63 }
 0x114   : > { %v737_v12 = vld [vmem:[#allocation2 + $0x3c] sm:$0x1]  ;;  %v638_v14 = vsel %vm3157_vm6, %v492_v1, %v637_v55  ;;  %v526_v15 = vor.u32 %v524_v60, %v523_v3  ;;  %v527_v17 = vrot.slane %v523_v3, 4  ;;  %636 = vst [vmem:[#allocation2 + $0x14] sm:$0x1] %v635_v9  ;;  %v570_v23 = vrot.slane %v3178_v44, 4 }
 0x115   : > { %v669_v19 = vld [vmem:[#allocation2 + $0x50] sm:$0x1]  ;;  %v738_v20 = vsel %vm3187_vm7, 0, %v737_v12  ;;  %v3207_v21 = vld [vmem:[#allocation2 + $0x40] sm:$0xf]  ;;  %v501_v24 = vsel %vm3148_vm4, %v493_v2, %v500_v5  ;;  %v534_v26 = vor.u32 %v532_v62, %v531_v7  ;;  %v536_v25 = vrot.slane %v531_v7, 4 }
 0x116   : > { %v725_v22 = vld [vmem:[#allocation2 + $0xc] sm:$0x1]  ;;  %639 = vst [vmem:[#allocation2 + $0x18] sm:$0xf] %v638_v14  ;;  %664 = vst [vmem:[#allocation2 + $0x44] sm:$0x1] %v663_v18  ;;  %v652_v27 = vsel %vm3157_vm6, %v526_v15, %v651_v4  ;;  %v642_v35 = vsel %vm3187_vm7, %v502_v6, %v641_v10  ;;  %v670_v45 = vsel %vm3187_vm7, %v570_v23, %v669_v19 }
 0x117   : > { %739 = vst [vmem:[#allocation2 + $0x3c] sm:$0x1] %v738_v20  ;;  %v726_v13 = vsel %vm3187_vm7, 0, %v725_v22  ;;  %640 = vst.msk [vmem:[#allocation2 + $0x1c] sm:$0xf] %vm440_vm3, %v501_v24  ;;  %vm1096_vm8 = vcmask 1042432   ;;  %v535_v33 = vsel %vm3148_vm4, %v527_v17, %v534_v26  ;;  %v656_v39 = vsel %vm3187_vm7, %v536_v25, %v655_v8 }
 0x118   : > { %v3217_v28 = vld [vmem:[#allocation2 + $0xc] sm:$0xe]  ;;  %v3219_v29 = vld [vmem:[#allocation2 + $0x3c] sm:$0xe]  ;;  %v410_v30 = vld [vmem:[%s344_s1] sm:$0xf] }
 0x119   : > { %727 = vst [vmem:[#allocation2 + $0xc] sm:$0x1] %v726_v13  ;;  %v3223_v31 = vld [vmem:[#allocation2 + $0x10] sm:$0xf]  ;;  %v740_v32 = vld [vmem:[#allocation2 + $0x48] sm:$0x1] }
 0x11a   : > { %653 = vst [vmem:[#allocation2 + $0x30] sm:$0xf] %v652_v27  ;;  %v1136_v34 = vrot.slane %v3207_v21, 5  ;;  %vm3230_vm9 = vcmp.eq.s32.totalorder %v413_v58, 1  ;;  %v854_v37 = vshrl.u32 %v3223_v31, 16  ;;  %v741_v38 = vsel %vm3187_vm7, 0, %v740_v32 }
 0x11b   : > { %654 = vst.msk [vmem:[#allocation2 + $0x34] sm:$0xf] %vm440_vm3, %v535_v33  ;;  %643 = vst [vmem:[#allocation2 + $0x20] sm:$0x1] %v642_v35  ;;  %v3240_v40 = vld [vmem:[#allocation2 + $0x48] sm:$0xe] }
 0x11c   : > { %v411_v41 = vld [vmem:[%s344_s1 + $0x4] sm:$0xf]  ;;  %v950_v43 = vshrl.u32 %v3207_v21, 16  ;;  %742 = vst [vmem:[#allocation2 + $0x48] sm:$0x1] %v741_v38  ;;  %vm1097_vm11 = vcmask 1046532  }
 0x11d   : > { %657 = vst [vmem:[#allocation2 + $0x38] sm:$0x1] %v656_v39  ;;  %v1108_v44 = vrot.slane %v3223_v31, 5  ;;  %v850_v46 = vshll.u32 %v3223_v31, 16  ;;  %v3255_v47 = vld [vmem:[#allocation2 + $0x4c] sm:$0xf]  ;;  %vm3301_vm12 = vmor %vm1096_vm8, %vm1097_vm11 }
 0x11e   : > { %v1992_v48 = vrot.slane %v3217_v28, 9  ;;  %v1996_v49 = vrot.slane %v3219_v29, 9  ;;  %v3261_v50 = vrot.slane %v1136_v34, 4  ;;  %671 = vst [vmem:[#allocation2 + $0x50] sm:$0x1] %v670_v45  ;;  %v3263_v51 = vrot.slane %v854_v37, 4 }
 0x11f   : > { %v756_v53 = vld [vmem:[#allocation2 + $0x14] sm:$0x1]  ;;  %v1997_v54 = vrot.slane %v3240_v40, 9  ;;  %v3268_v55 = vsel %vm3230_vm9, %v410_v30, 0  ;;  %v3272_v56 = vsel %vm3230_vm9, %v411_v41, 0  ;;  %v974_v57 = vshrl.u32 %v3255_v47, 16 }
 0x120   : > { %v728_v58 = vld [vmem:[#allocation2 + $0x18] sm:$0x1]  ;;  %v757_v59 = vsel %vm3246_vm10, 0, %v756_v53  ;;  %v768_v60 = vld [vmem:[#allocation2 + $0x44] sm:$0x1]  ;;  %v1110_v63 = vrot.slane %v1108_v44, 4  ;;  %v1109_v38 = vsel %vm3301_vm12, %v1992_v48, %v1108_v44  ;;  %v1137_v39 = vsel %vm3301_vm12, %v1996_v49, %v1136_v34 }
 0x121   : > { %v793_v61 = vld [vmem:[#allocation2 + $0x3c] sm:$0xf]  ;;  %v729_v62 = vsel %vm3187_vm7, 0, %v728_v58  ;;  %758 = vst [vmem:[#allocation2 + $0x14] sm:$0x1] %v757_v59  ;;  %v769_v0 = vsel %vm3246_vm10, 0, %v768_v60 }
 0x122   : > { %v1143_v1 = vrot.slane %v3255_v47, 5  ;;  %v3283_v2 = vcombine.low %v793_v61, %v3207_v21  ;;  %v937_v3 = vshrl.u32 %v793_v61, 16  ;;  %v940_v4 = vshll.u32 %v793_v61, 16  ;;  %v785_v5 = vld [vmem:[#allocation2 + $0xc] sm:$0xf]  ;;  %s2668_s17 = smov 12  }
 0x123   : > { %730 = vst [vmem:[#allocation2 + $0x18] sm:$0x1] %v729_v62  ;;  %770 = vst [vmem:[#allocation2 + $0x44] sm:$0x1] %v769_v0  ;;  %v421_v6 = vshrl.u32 %v3268_v55, 16  ;;  %v3287_v7 = vcombine.low %v785_v5, %v3223_v31  ;;  %v841_v8 = vshrl.u32 %v785_v5, 16 }
 0x124   : > { %v844_v9 = vshll.u32 %v785_v5, 16  ;;  %v3289_v10 = vld [vmem:[#allocation2 + $0x34] sm:$0xf]  ;;  %v1060_v12 = vld [vmem:[#allocation2 + $0x30] sm:$0xe]  ;;  %1293 = vrot.lane.b32.xlu1 %v3283_v2, %s2668_s17  ;;  %v3293_v14 = vrot.slane %v937_v3, 4  ;;  %v3344_v34 = vsel %vm3301_vm12, %v1997_v54, %v1143_v1 }
 0x125   : > { %v3295_v15 = vrot.slane %v940_v4, 5  ;;  %v795_v17 = vld [vmem:[#allocation2 + $0x48] sm:$0xf]  ;;  %v765_v18 = vld [vmem:[#allocation2 + $0x38] sm:$0x1]  ;;  %1285 = vrot.lane.b32.xlu0 %v3287_v7, %s2668_s17  ;;  %v843_v19 = vrot.slane %v841_v8, 4 }
 0x126   : > { %v846_v20 = vrot.slane %v844_v9, 5  ;;  %v961_v22 = vshrl.u32 %v795_v17, 16  ;;  %v964_v23 = vshll.u32 %v795_v17, 16  ;;  %v759_v26 = vld [vmem:[#allocation2 + $0x20] sm:$0x1]  ;;  %v3306_v13 = vcombine.low %v795_v17, %v3255_v47  ;;  %s2669_s20 = smov 24  }
 0x127   : > { %v766_v25 = vsel %vm3246_vm10, 0, %v765_v18  ;;  %v1995_v27 = vrot.slane %v1060_v12, 9  ;;  %v1129_v28 = vrot.slane %v3289_v10, 5  ;;  %v1058_v29 = vld [vmem:[#allocation2 + $0x18] sm:$0xe]  ;;  %v760_v36 = vsel %vm3246_vm10, 0, %v759_v26 }
 0x128   : > { %v847_v30 = vor.u32 %v846_v20, %v843_v19  ;;  %v3311_v32 = vrot.slane %v961_v22, 4  ;;  %v3313_v33 = vrot.slane %v964_v23, 5  ;;  %v3315_v35 = vld [vmem:[#allocation2 + $0x1c] sm:$0xf]  ;;  %767 = vst [vmem:[#allocation2 + $0x38] sm:$0x1] %v766_v25  ;;  %1295 = vrot.lane.b32.xlu1 %v3306_v13, %s2668_s17  ;;  %v943_v54 = vor.u32 %v3295_v15, %v3293_v14 }
 0x129   : > { %v3321_v37 = vld [vmem:[#allocation2 + $0x14] sm:$0x1]  ;;  %761 = vst [vmem:[#allocation2 + $0x20] sm:$0x1] %v760_v36  ;;  %v1993_v41 = vrot.slane %v1058_v29, 9  ;;  %v1115_v45 = vrot.slane %v3315_v35, 5  ;;  %v1130_v60 = vsel %vm3301_vm12, %v1995_v27, %v1129_v28 }
 0x12a   : > { %v771_v53 = vld [vmem:[#allocation2 + $0x50] sm:$0x1]  ;;  %vm813_vm13 = vsmask.f32 3328  ;;  %vm814_vm14 = vsmask.f32 7440  ;;  %v967_v12 = vor.u32 %v3313_v33, %v3311_v32 }
 0x12b   : > { %v3330_v58 = vld [vmem:[#allocation2 + $0x18] sm:$0xf]  ;;  %v878_v59 = vshrl.u32 %v3315_v35, 16  ;;  %v1111_v44 = vrot.slane %v3321_v37, 5  ;;  %v3336_v48 = vld [vmem:[#allocation2 + $0x44] sm:$0x1]  ;;  %v1116_v8 = vsel %vm3301_vm12, %v1993_v41, %v1115_v45  ;;  %vm3413_vm15 = vmor %vm813_vm13, %vm814_vm14 }
 0x12c   : > { %v865_v49 = vshrl.u32 %v3330_v58, 16  ;;  %v3349_v61 = vcombine.low %v3330_v58, %v3315_v35  ;;  %v1131_v62 = vrot.slane %v1129_v28, 4  ;;  %v1139_v0 = vrot.slane %v3336_v48, 5  ;;  %1351 = vrot.lane.b32.xlu1 %v3306_v13, %s2669_s20  ;;  %v443_v22 = vld [vmem:[#allocation2] sm:$0xf]  ;;  %s2670_s14 = smov 8  }
 0x12d   : > { %v3352_v3 = vrot.slane %v847_v30, 4  ;;  %v1112_v4 = vsel %vm3301_vm12, %v1110_v63, %v1111_v44  ;;  %v772_v40 = vsel %vm3246_vm10, 0, %v771_v53  ;;  %v868_v5 = vshll.u32 %v3330_v58, 16  ;;  %v734_v63 = vld [vmem:[#allocation2 + $0x30] sm:$0x1]  ;;  %s2671_s11 = smov 20  }
 0x12e   : > { %1287 = vrot.lane.b32.xlu0 %v3349_v61, %s2668_s17  ;;  %v1117_v9 = vrot.slane %v1115_v45, 4  ;;  %773 = vst [vmem:[#allocation2 + $0x50] sm:$0x1] %v772_v40  ;;  %v3369_v17 = vrot.slane %v865_v49, 4  ;;  %v2018_v18 = vcombine.low %v1109_v38, %v1112_v4  ;;  %v423_v19 = vrot.slane %v421_v6, 7  ;;  %s2672_s0 = smov 4  }
 0x12f   : > { %v424_v20 = vshll.u32 %v3268_v55, 16  ;;  %v3374_v23 = vld [vmem:[#allocation2 + $0x38] sm:$0x1]  ;;  %v1140_v26 = vsel %vm3301_vm12, %v3261_v50, %v1139_v0  ;;  %v429_v25 = vshrl.u32 %v3272_v56, 16  ;;  %v432_v27 = vshll.u32 %v3272_v56, 16  ;;  %p686_p12 = scmp.lt.s32.totalorder %s4063_s10, 1 }
 0x130   : > { %v3383_v28 = vrot.slane %v850_v46, 5  ;;  %v1132_v29 = vrot.slane %v3374_v23, 5  ;;  %v3386_v6 = vld [vmem:[#allocation2 + $0x20] sm:$0x1]  ;;  %v860_v30 = vshll.u32 %v3321_v37, 16  ;;  %v735_v36 = vsel %vm3187_vm7, 0, %v734_v63 }
 0x131   : > { %v426_v55 = vor.u32 %v424_v20, %v423_v19  ;;  %v1118_v50 = vrot.slane %v3386_v6, 5  ;;  %v427_v56 = vrot.slane %v423_v19, 4  ;;  %v431_v38 = vrot.slane %v429_v25, 7  ;;  %736 = vst [vmem:[#allocation2 + $0x30] sm:$0x1] %v735_v36  ;;  %s2674_s18 = smov 28  }
 0x132   : > { %1343 = vrot.lane.b32.xlu0 %v3349_v61, %s2669_s20  ;;  %v857_v31 = vor.u32 %v3263_v51, %v3383_v28  ;;  %v1133_v46 = vsel %vm3301_vm12, %v1131_v62, %v1132_v29  ;;  %v3398_v41 = vcombine.low %v1137_v39, %v1140_v26  ;;  %v450_v45 = vld [vmem:[#allocation2 + $0x8] sm:$0x1]  ;;  %v922_v53 = vshll.u32 %v3289_v10, 16  ;;  %s3619_s29 = scalar_select %p686_p12, 1, 0 }
 0x133   : > { %v444_v37 = vsel %vm3157_vm6, %v426_v55, %v443_v22  ;;  %v3403_v58 = vcombine.low %v1130_v60, %v1133_v46  ;;  %v1145_v44 = vrot.slane %v1143_v1, 4  ;;  %v434_v49 = vor.u32 %v432_v27, %v431_v38  ;;  %s2675_s19 = smov 32   ;;  %s4080_s27 = sld [smem:[#allocation23_spill]] }
 0x134   : > { %v436_v0 = vrot.slane %v431_v38, 4  ;;  %445 = vst [vmem:[#allocation2] sm:$0xf] %v444_v37  ;;  %v1119_v51 = vsel %vm3301_vm12, %v1117_v9, %v1118_v50  ;;  %v862_v4 = vrot.slane %v860_v30, 5  ;;  %v3417_v60 = vrot.slane %v922_v53, 5  ;;  %s3869_s16 = scalar_lea.vmem [#allocation12], %s1985_s30 }
 0x135   : > { %v3409_v62 = vld [vmem:[#allocation2 + $0x50] sm:$0x1]  ;;  %v926_v40 = vshrl.u32 %v3289_v10, 16  ;;  %1273 = vrot.lane.b32.xlu1 %v3403_v58, %s2670_s14  ;;  %v435_v9 = vsel %vm3148_vm4, %v427_v56, %v434_v49  ;;  %v858_v19 = vrot.slane %v857_v31, 4  ;;  %v870_v20 = vrot.slane %v868_v5, 5  ;;  %s2060_s1 = sshll.u32 %s4063_s10, 4 }
 0x136   : > { %1267 = vrot.lane.b32.xlu0 %v2018_v18, %s2670_s14  ;;  %v1146_v1 = vrot.slane %v3409_v62, 5  ;;  %v451_v63 = vsel %vm3187_vm7, %v436_v0, %v450_v45  ;;  %447 = vst.msk [vmem:[#allocation2 + $0x4] sm:$0xf] %vm440_vm3, %v435_v9  ;;  %v932_v26 = vshll.u32 %v3374_v23, 16  ;;  %v946_v25 = vshll.u32 %v3207_v21, 16  ;;  %s1798_s4 = sshll.u32 %s3869_s16, 4  ;;  %s3878_s4 = int_to_ptr.vmem [resolvable:$true] %s1798_s4 }
 0x137   : > { %452 = vst [vmem:[#allocation2 + $0x8] sm:$0x1] %v451_v63  ;;  %v928_v22 = vrot.slane %v926_v40, 4  ;;  %v853_v29 = vsel %vm3413_vm15, %v3352_v3, %v3383_v28  ;;  %v944_v5 = vrot.slane %v943_v54, 4  ;;  %v952_v55 = vrot.slane %v950_v43, 4  ;;  %s4081_s7 = sld [smem:[#allocation36_spill]] }
 0x138   : > { %v1147_v27 = vsel %vm3301_vm12, %v1145_v44, %v1146_v1  ;;  %v3442_v30 = vcombine.low %v1116_v8, %v1119_v51  ;;  %v791_v23 = vld [vmem:[#allocation2 + $0x30] sm:$0xf]  ;;  %v948_v50 = vrot.slane %v946_v25, 5  ;;  %v956_v56 = vshll.u32 %v3336_v48, 16  ;;  %v457_v9 = vld [vmem:[%s3114_s3 + $0x10] sm:$0xf] }
 0x139   : > { %v929_v36 = vor.u32 %v928_v22, %v3417_v60  ;;  %1275 = vrot.lane.b32.xlu1 %v3398_v41, %s2670_s14  ;;  %v863_v14 = vsel %vm3413_vm15, %v858_v19, %v862_v4  ;;  %v913_v15 = vshrl.u32 %v791_v23, 16  ;;  %v916_v21 = vshll.u32 %v791_v23, 16  ;;  %s2061_s8 = sshll.u32 %s4080_s27, 5  ;;  %p4082_p0 = scmp.ne.s32.totalorder %s4034_s2, 0 }
 0x13a   : > { %1323 = vrot.lane.b32.xlu0 %v2018_v18, %s2671_s11  ;;  %v874_v43 = vshll.u32 %v3315_v35, 16  ;;  %v3453_v3 = vcombine.low %v3344_v34, %v1147_v27  ;;  %v3455_v8 = vrot.slane %v932_v26, 5  ;;  %v953_v48 = vor.u32 %v952_v55, %v948_v50  ;;  %s1795_s30 = sadd.s32 %s2061_s8, %s2060_s1 }
 0x13b   : > { %v1056_v54 = vld [vmem:[#allocation2] sm:$0xe]  ;;  %v958_v28 = vrot.slane %v956_v56, 5  ;;  %v915_v38 = vrot.slane %v913_v15, 4  ;;  %v918_v31 = vrot.slane %v916_v21, 5  ;;  %v3457_v46 = vrot.slane %v929_v36, 4 }
 0x13c   : > { %v871_v18 = vor.u32 %v870_v20, %v3369_v17  ;;  %v949_v37 = vsel %vm3413_vm15, %v944_v5, %v948_v50  ;;  %v954_v45 = vrot.slane %v953_v48, 4  ;;  %v3462_v53 = vrot.slane %v874_v43, 5  ;;  %v458_v20 = vld [vmem:[%s3114_s3 + $0x14] sm:$0xf]  ;;  %v465_v50 = vld [vmem:[%s3114_s3 + $0x30] sm:$0xf] }
 0x13d   : > { %v880_v34 = vrot.slane %v878_v59, 4  ;;  %1331 = vrot.lane.b32.xlu1 %v3398_v41, %s2671_s11  ;;  %v3470_v49 = vld [vmem:[#allocation2 + $0x4] sm:$0xf]  ;;  %v1991_v17 = vrot.slane %v1056_v54, 9  ;;  %v919_v0 = vor.u32 %v918_v31, %v915_v38  ;;  %v884_v51 = vshll.u32 %v3386_v6, 16  ;;  %s2062_s22 = sshll.u32 %s1795_s30, 6 }
 0x13e   : > { %1325 = vrot.lane.b32.xlu0 %v3442_v30, %s2671_s11  ;;  %v753_v44 = vld [vmem:[#allocation2 + $0x8] sm:$0x1]  ;;  %v3474_v4 = vcombine.low %v791_v23, %v3289_v10  ;;  %v1101_v59 = vrot.slane %v3470_v49, 5  ;;  %v3479_v40 = vcombine.low %v853_v29, %v863_v14  ;;  %v959_v1 = vsel %vm3413_vm15, %v954_v45, %v958_v28  ;;  %v466_v15 = vld [vmem:[%s3114_s3 + $0x34] sm:$0xf] }
 0x13f   : > { %v754_v35 = vsel %vm3246_vm10, 0, %v753_v44  ;;  %v920_v63 = vrot.slane %v919_v0, 4  ;;  %v935_v6 = vsel %vm3413_vm15, %v3457_v46, %v3455_v8  ;;  %v3488_v10 = vrot.slane %v871_v18, 4  ;;  %v644_v8 = vld [vmem:[#allocation2 + $0x24] sm:$0xf] }
 0x140   : > { %755 = vst [vmem:[#allocation2 + $0x8] sm:$0x1] %v754_v35  ;;  %v881_v19 = vor.u32 %v880_v34, %v3462_v53  ;;  %v3492_v22 = vcombine.low %v949_v37, %v959_v1  ;;  %v968_v26 = vrot.slane %v967_v12, 4  ;;  %v970_v25 = vshll.u32 %v3255_v47, 16  ;;  %v722_v31 = vld [vmem:[#allocation2] sm:$0x1] }
 0x141   : > { %v976_v27 = vrot.slane %v974_v57, 4  ;;  %1333 = vrot.lane.b32.xlu1 %v3453_v3, %s2671_s11  ;;  %v1102_v29 = vsel %vm3301_vm12, %v1991_v17, %v1101_v59  ;;  %v3504_v5 = vrot.slane %v884_v51, 5  ;;  %v980_v55 = vshll.u32 %v3409_v62, 16 }
 0x142   : > { %v504_v23 = vshrl.u32 %v457_v9, 16  ;;  %v1103_v36 = vrot.slane %v1101_v59, 4  ;;  %v972_v32 = vrot.slane %v970_v25, 5  ;;  %v507_v33 = vshll.u32 %v457_v9, 16  ;;  %v672_v9 = vld [vmem:[#allocation2 + $0x54] sm:$0xf] }
 0x143   : > { %v512_v12 = vshrl.u32 %v458_v20, 16  ;;  %v925_v47 = vsel %vm3413_vm15, %v920_v63, %v3417_v60  ;;  %v3511_v57 = vrot.slane %v881_v19, 4  ;;  %v515_v14 = vshll.u32 %v458_v20, 16  ;;  %v648_v19 = vld [vmem:[#allocation2 + $0x2c] sm:$0x1] }
 0x144   : > { %v506_v56 = vrot.slane %v504_v23, 7  ;;  %v973_v21 = vsel %vm3413_vm15, %v968_v26, %v972_v32  ;;  %v977_v43 = vor.u32 %v976_v27, %v972_v32  ;;  %v982_v62 = vrot.slane %v980_v55, 5  ;;  %v676_v55 = vld [vmem:[#allocation2 + $0x5c] sm:$0x1]  ;;  %v467_v23 = vld [vmem:[%s3114_s3 + $0x38] sm:$0xf] }
 0x145   : > { %v514_v54 = vrot.slane %v512_v12, 7  ;;  %1227 = vrot.lane.b32.xlu1 %v3479_v40, %s2672_s0  ;;  %v572_v38 = vshrl.u32 %v465_v50, 16  ;;  %v575_v60 = vshll.u32 %v465_v50, 16  ;;  %v580_v34 = vshrl.u32 %v466_v15, 16 }
 0x146   : > { %v509_v48 = vor.u32 %v507_v33, %v506_v56  ;;  %v510_v28 = vrot.slane %v506_v56, 4  ;;  %v978_v18 = vrot.slane %v977_v43, 4  ;;  %v583_v51 = vshll.u32 %v466_v15, 16  ;;  %v468_v56 = vld [vmem:[%s3114_s3 + $0x3c] sm:$0xf]  ;;  %s2673_s3 = smov 16  }
 0x147   : > { %v3518_v46 = vld [vmem:[#allocation2 + $0x8] sm:$0x1]  ;;  %v517_v37 = vor.u32 %v515_v14, %v514_v54  ;;  %v519_v45 = vrot.slane %v514_v54, 4  ;;  %v574_v0 = vrot.slane %v572_v38, 7  ;;  %v582_v1 = vrot.slane %v580_v34, 7 }
 0x148   : > { %v1104_v44 = vrot.slane %v3518_v46, 5  ;;  %v645_v17 = vsel %vm3157_vm6, %v509_v48, %v644_v8  ;;  %v983_v35 = vsel %vm3413_vm15, %v978_v18, %v982_v62  ;;  %v723_v63 = vsel %vm3187_vm7, 0, %v722_v31 }
 0x149   : > { %v518_v59 = vsel %vm3148_vm4, %v510_v28, %v517_v37  ;;  %646 = vst [vmem:[#allocation2 + $0x24] sm:$0xf] %v645_v17  ;;  %v3531_v26 = vcombine.low %v925_v47, %v935_v6  ;;  %1235 = vrot.lane.b32.xlu1 %v3492_v22, %s2672_s0  ;;  %v577_v25 = vor.u32 %v575_v60, %v574_v0  ;;  %v578_v27 = vrot.slane %v574_v0, 4  ;;  %v679_v37 = vld [vmem:[#allocation2 + $0x60] sm:$0xf] }
 0x14a   : > { %v1105_v20 = vsel %vm3301_vm12, %v1103_v36, %v1104_v44  ;;  %647 = vst.msk [vmem:[#allocation2 + $0x28] sm:$0xf] %vm440_vm3, %v518_v59  ;;  %724 = vst [vmem:[#allocation2] sm:$0x1] %v723_v63  ;;  %v585_v33 = vor.u32 %v583_v51, %v582_v1  ;;  %v587_v12 = vrot.slane %v582_v1, 4  ;;  %v826_v50 = vshll.u32 %v3470_v49, 16 }
 0x14b   : > { %v2017_v32 = vcombine.low %v1102_v29, %v1105_v20  ;;  %v3539_v14 = vcombine.low %v973_v21, %v983_v35  ;;  %v673_v6 = vsel %vm3157_vm6, %v577_v25, %v672_v9  ;;  %v830_v36 = vshrl.u32 %v3470_v49, 16 }
 0x14c   : > { %v649_v47 = vsel %vm3187_vm7, %v519_v45, %v648_v19  ;;  %v586_v29 = vsel %vm3148_vm4, %v578_v27, %v585_v33  ;;  %674 = vst [vmem:[#allocation2 + $0x54] sm:$0xf] %v673_v6  ;;  %v3549_v15 = vrot.slane %v826_v50, 5  ;;  %v677_v21 = vsel %vm3187_vm7, %v587_v12, %v676_v55 }
 0x14d   : > { %1265 = vrot.lane.b32.xlu0 %v2017_v32, %s2670_s14  ;;  %650 = vst [vmem:[#allocation2 + $0x2c] sm:$0x1] %v649_v47  ;;  %v589_v43 = vshrl.u32 %v467_v23, 16  ;;  %1312 = vrot.lane.b32.xlu1 %v3492_v22, %s2673_s3  ;;  %675 = vst.msk [vmem:[#allocation2 + $0x58] sm:$0xf] %vm440_vm3, %v586_v29  ;;  %v832_v62 = vrot.slane %v830_v36, 4  ;;  %v877_v60 = vsel %vm3413_vm15, %v3488_v10, %v3462_v53 }
 0x14e   : > { %v836_v54 = vshll.u32 %v3518_v46, 16  ;;  %678 = vst [vmem:[#allocation2 + $0x5c] sm:$0x1] %v677_v21  ;;  %v592_v8 = vshll.u32 %v467_v23, 16  ;;  %v597_v48 = vshrl.u32 %v468_v56, 16  ;;  %v600_v38 = vshll.u32 %v468_v56, 16 }
 0x14f   : > { %v591_v28 = vrot.slane %v589_v43, 7  ;;  %v833_v18 = vor.u32 %v832_v62, %v3549_v15  ;;  %v887_v46 = vsel %vm3413_vm15, %v3511_v57, %v3504_v5  ;;  %v683_v62 = vld [vmem:[#allocation2 + $0x68] sm:$0x1]  ;;  %vm1585_vm1 = vcmask 1041408  }
 0x150   : > { %v731_v31 = vld [vmem:[#allocation2 + $0x24] sm:$0x1]  ;;  %v599_v10 = vrot.slane %v597_v48, 7  ;;  %v838_v5 = vrot.slane %v836_v54, 5  ;;  %v3584_v27 = vcombine.low %v877_v60, %v887_v46  ;;  %v2352_v46 = vld [vmem:[#allocation9] sm:$0xff]   ;;  %vm1397_vm2 = vcmask 31744  }
 0x151   : > { %1233 = vrot.lane.b32.xlu0 %v3531_v26, %s2672_s0  ;;  %v732_v45 = vsel %vm3187_vm7, 0, %v731_v31  ;;  %v3570_v34 = vld [vmem:[#allocation2 + $0x28] sm:$0xf]  ;;  %v3572_v44 = vld [vmem:[#allocation2] sm:$0xf]  ;;  %v594_v53 = vor.u32 %v592_v8, %v591_v28  ;;  %1314 = vrot.lane.b32.xlu1 %v3539_v14, %s2673_s3  ;;  %v834_v57 = vrot.slane %v833_v18, 4 }
 0x152   : > { %733 = vst [vmem:[#allocation2 + $0x24] sm:$0x1] %v732_v45  ;;  %v902_v17 = vshrl.u32 %v3570_v34, 16  ;;  %v817_v0 = vshrl.u32 %v3572_v44, 16  ;;  %v820_v51 = vshll.u32 %v3572_v44, 16  ;;  %v898_v35 = vshll.u32 %v3570_v34, 16  ;;  %2146 = vmatprep.subr.bf16.mxu0 %v2352_v46  ;;  %2168 = vmatprep.subr.bf16.mxu1 %v2352_v46 }
 0x153   : > { %v595_v59 = vrot.slane %v591_v28, 4  ;;  %v602_v1 = vor.u32 %v600_v38, %v599_v10  ;;  %v743_v9 = vld [vmem:[#allocation2 + $0x54] sm:$0x1]  ;;  %v680_v25 = vsel %vm3157_vm6, %v594_v53, %v679_v37  ;;  %v839_v8 = vsel %vm3413_vm15, %v834_v57, %v838_v5  ;;  %2147 = vmatpush3.bf16.msra.mxu0 %v2352_v46  ;;  %2171 = vmatpush3.bf16.msra.mxu1 %v2352_v46 }
 0x154   : > { %v819_v63 = vrot.slane %v817_v0, 4  ;;  %v822_v19 = vrot.slane %v820_v51, 5  ;;  %v762_v20 = vld [vmem:[#allocation2 + $0x2c] sm:$0x1]  ;;  %v744_v55 = vsel %vm3187_vm7, 0, %v743_v9  ;;  %v3599_v36 = vrot.slane %v898_v35, 5 }
 0x155   : > { %1304 = vrot.lane.b32.xlu0 %v3479_v40, %s2673_s3  ;;  %v3588_v23 = vld [vmem:[#allocation2 + $0x58] sm:$0xf]  ;;  %v774_v32 = vld [vmem:[#allocation2 + $0x5c] sm:$0x1]  ;;  %v763_v33 = vsel %vm3246_vm10, 0, %v762_v20  ;;  %v603_v12 = vsel %vm3148_vm4, %v595_v59, %v602_v1  ;;  %v904_v47 = vrot.slane %v902_v17, 4  ;;  %v2001_v0 = vcombine.low %v3572_v44, %v3470_v49 }
 0x156   : > { %681 = vst [vmem:[#allocation2 + $0x60] sm:$0xf] %v680_v25  ;;  %745 = vst [vmem:[#allocation2 + $0x54] sm:$0x1] %v744_v55  ;;  %v998_v50 = vshrl.u32 %v3588_v23, 16  ;;  %v823_v40 = vor.u32 %v822_v19, %v819_v63  ;;  %v775_v56 = vsel %vm3246_vm10, 0, %v774_v32  ;;  %v690_v55 = vstv %s3619_s29 }
 0x157   : > { %v994_v6 = vshll.u32 %v3588_v23, 16  ;;  %764 = vst [vmem:[#allocation2 + $0x2c] sm:$0x1] %v763_v33  ;;  %682 = vst.msk [vmem:[#allocation2 + $0x64] sm:$0xf] %vm440_vm3, %v603_v12  ;;  %v604_v48 = vrot.slane %v599_v10, 4  ;;  %v905_v18 = vor.u32 %v904_v47, %v3599_v36 }
 0x158   : > { %776 = vst [vmem:[#allocation2 + $0x5c] sm:$0x1] %v775_v56  ;;  %v824_v29 = vrot.slane %v823_v40, 4  ;;  %v1000_v43 = vrot.slane %v998_v50, 4  ;;  %v2353_v32 = vld [vmem:[#allocation9 + $0x8] sm:$0xff]   ;;  %vm3646_vm0 = vcmp.eq.s32.totalorder %v690_v55, 1 }
 0x159   : > { %v3602_v21 = vrot.slane %v994_v6, 5  ;;  %1306 = vrot.lane.b32.xlu0 %v3584_v27, %s2673_s3  ;;  %v789_v54 = vld [vmem:[#allocation2 + $0x24] sm:$0xf]  ;;  %v684_v37 = vsel %vm3187_vm7, %v604_v48, %v683_v62  ;;  %v906_v20 = vrot.slane %v905_v18, 4  ;;  %2148 = vmatprep.subr.bf16.mxu0 %v2353_v32  ;;  %v688_v48 = vld [vmem:[%s353_s9 + $0x4] sm:$0xf] }
 0x15a   : > { %v889_v28 = vshrl.u32 %v789_v54, 16  ;;  %v892_v38 = vshll.u32 %v789_v54, 16  ;;  %v3609_v60 = vcombine.low %v789_v54, %v3570_v34  ;;  %v829_v31 = vsel %vm3413_vm15, %v824_v29, %v3549_v15  ;;  %685 = vst [vmem:[#allocation2 + $0x68] sm:$0x1] %v684_v37  ;;  %2169 = vmatprep.subr.bf16.mxu1 %v2353_v32  ;;  %2149 = vmatpush3.bf16.msra.mxu0 %v2353_v32  ;;  %v1059_v18 = vld [vmem:[#allocation2 + $0x24] sm:$0xe] }
 0x15b   : > { %v1001_v10 = vor.u32 %v1000_v43, %v3602_v21  ;;  %v2009_v51 = vcombine.low %v829_v31, %v839_v8  ;;  %v687_v43 = vld [vmem:[%s353_s9] sm:$0xf]  ;;  %2172 = vmatpush3.bf16.msra.mxu1 %v2353_v32  ;;  %v1122_v37 = vrot.slane %v3570_v34, 5  ;;  %v715_v32 = vld [vmem:[#allocation2 + $0x6c] sm:$0xf]  ;;  %vm1456_vm5 = vcmask 130048  }
 0x15c   : > { %v891_v45 = vrot.slane %v889_v28, 4  ;;  %v894_v53 = vrot.slane %v892_v38, 5  ;;  %v692_v46 = vsel %vm3646_vm0, %v687_v43, 0  ;;  %vm1507_vm8 = vcmask 228352  }
 0x15d   : > { %v746_v17 = vld [vmem:[#allocation2 + $0x60] sm:$0x1]  ;;  %1345 = vrot.lane.b32.xlu0 %v3609_v60, %s2669_s20  ;;  %v797_v15 = vld [vmem:[#allocation2 + $0x54] sm:$0xf]  ;;  %v1002_v50 = vrot.slane %v1001_v10, 4  ;;  %v1150_v10 = vrot.slane %v3588_v23, 5 }
 0x15e   : > { %v3626_v5 = vld [vmem:[#allocation2 + $0x2c] sm:$0x1]  ;;  %v747_v57 = vsel %vm3187_vm7, 0, %v746_v17  ;;  %v985_v35 = vshrl.u32 %v797_v15, 16  ;;  %v988_v59 = vshll.u32 %v797_v15, 16  ;;  %v3631_v1 = vcombine.low %v797_v15, %v3588_v23 }
 0x15f   : > { %v3633_v9 = vld [vmem:[#allocation2 + $0x5c] sm:$0x1]  ;;  %v895_v63 = vor.u32 %v894_v53, %v891_v45  ;;  %748 = vst [vmem:[#allocation2 + $0x60] sm:$0x1] %v747_v57  ;;  %v908_v25 = vshll.u32 %v3626_v5, 16  ;;  %v693_v17 = vsel %vm3646_vm0, %v688_v48, 0 }
 0x160   : > { %v1004_v19 = vshll.u32 %v3633_v9, 16  ;;  %v987_v33 = vrot.slane %v985_v35, 4  ;;  %v990_v12 = vrot.slane %v988_v59, 5  ;;  %1353 = vrot.lane.b32.xlu1 %v3631_v1, %s2669_s20  ;;  %v1063_v53 = vld [vmem:[#allocation2 + $0x54] sm:$0xe]  ;;  %v695_v57 = vshrl.u32 %v692_v46, 16 }
 0x161   : > { %v896_v40 = vrot.slane %v895_v63, 4  ;;  %1225 = vrot.lane.b32.xlu0 %v2009_v51, %s2672_s0  ;;  %v910_v6 = vrot.slane %v908_v25, 5  ;;  %v777_v8 = vld [vmem:[#allocation2 + $0x68] sm:$0x1]  ;;  %v1994_v51 = vrot.slane %v1059_v18, 9  ;;  %v698_v35 = vshll.u32 %v692_v46, 16 }
 0x162   : > { %v1006_v56 = vrot.slane %v1004_v19, 5  ;;  %v991_v47 = vor.u32 %v990_v12, %v987_v33  ;;  %v778_v38 = vsel %vm3246_vm10, 0, %v777_v8  ;;  %v1998_v34 = vrot.slane %v1063_v53, 9  ;;  %v2354_v33 = vld [vmem:[#allocation9 + $0x10] ss:$0 sps:$4 sm:$0x33]  }
 0x163   : > { %v901_v29 = vsel %vm3413_vm15, %v896_v40, %v3599_v36  ;;  %v911_v54 = vsel %vm3413_vm15, %v906_v20, %v910_v6  ;;  %779 = vst [vmem:[#allocation2 + $0x68] sm:$0x1] %v778_v38  ;;  %v1124_v59 = vrot.slane %v1122_v37, 4  ;;  %v706_v63 = vshll.u32 %v693_v17, 16  ;;  %v719_v40 = vld [vmem:[#allocation2 + $0x74] sm:$0x1]  ;;  %2174 = vmatprep.subr.msk.bf16.mxu0 %vm1585_vm1, %v2354_v33  ;;  %2175 = vmatprep.subr.msk.bf16.mxu1 %vm1585_vm1, %v2354_v33 }
 0x164   : > { %1370 = vrot.lane.b32.xlu1 %v3539_v14, %s2674_s18  ;;  %v992_v36 = vrot.slane %v991_v47, 4  ;;  %v1007_v28 = vsel %vm3413_vm15, %v1002_v50, %v1006_v56  ;;  %v3662_v31 = vcombine.low %v901_v29, %v911_v54  ;;  %v1152_v19 = vrot.slane %v1150_v10, 4  ;;  %v800_v11 = vld [vmem:[#allocation2 + $0x64] sm:$0xf] }
 0x165   : > { %1362 = vrot.lane.b32.xlu0 %v3584_v27, %s2674_s18  ;;  %v1153_v23 = vrot.slane %v3633_v9, 5  ;;  %v1125_v20 = vrot.slane %v3626_v5, 5  ;;  %v697_v25 = vrot.slane %v695_v57, 7  ;;  %v1151_v56 = vsel %vm3301_vm12, %v1998_v34, %v1150_v10 }
 0x166   : > { %v997_v45 = vsel %vm3413_vm15, %v992_v36, %v3602_v21  ;;  %v703_v21 = vshrl.u32 %v693_v17, 16  ;;  %v1123_v5 = vsel %vm3301_vm12, %v1994_v51, %v1122_v37  ;;  %v1587_v8 = vsel %vm1585_vm1, %v2354_v33, 0 }
 0x167   : > { %v3673_v15 = vcombine.low %v997_v45, %v1007_v28  ;;  %v700_v12 = vor.u32 %v698_v35, %v697_v25  ;;  %v701_v50 = vrot.slane %v697_v25, 4  ;;  %v1154_v47 = vsel %vm3301_vm12, %v1152_v19, %v1153_v23  ;;  %2151 = vmatpush3.bf16.msra.mxu0 %v1587_v8  ;;  %2173 = vmatpush3.bf16.msra.mxu1 %v1587_v8  ;;  %v799_v28 = vld [vmem:[#allocation2 + $0x60] sm:$0xf] }
 0x168   : > { %v705_v55 = vrot.slane %v703_v21, 7  ;;  %v1126_v29 = vsel %vm3301_vm12, %v1124_v59, %v1125_v20  ;;  %v2024_v16 = vcombine.low %v1151_v56, %v1154_v47  ;;  %v1012_v37 = vshll.u32 %v799_v28, 16  ;;  %v1064_v23 = vld [vmem:[#allocation2 + $0x60] sm:$0xe] }
 0x169   : > { %1372 = vrot.lane.b32.xlu1 %v3673_v15, %s2674_s18  ;;  %1364 = vrot.lane.b32.xlu0 %v3662_v31, %s2674_s18  ;;  %v716_v43 = vsel %vm3157_vm6, %v700_v12, %v715_v32  ;;  %v2020_v48 = vcombine.low %v1123_v5, %v1126_v29  ;;  %v1022_v46 = vshrl.u32 %v800_v11, 16  ;;  %v1018_v45 = vshll.u32 %v800_v11, 16 }
 0x16a   : > { %v708_v9 = vor.u32 %v706_v63, %v705_v55  ;;  %v710_v6 = vrot.slane %v705_v55, 4  ;;  %717 = vst [vmem:[#allocation2 + $0x6c] sm:$0xf] %v716_v43  ;;  %v1014_v42 = vrot.slane %v1012_v37, 5  ;;  %v811_v17 = vld [vmem:[#allocation2 + $0x68] sm:$0x1] }
 0x16b   : > { %v1020_v53 = vrot.slane %v1018_v45, 5  ;;  %v1024_v10 = vrot.slane %v1022_v46, 4  ;;  %v1028_v35 = vshll.u32 %v811_v17, 16  ;;  %v1157_v21 = vrot.slane %v800_v11, 5 }
 0x16c   : > { %v709_v62 = vsel %vm3148_vm4, %v701_v50, %v708_v9  ;;  %v720_v54 = vsel %vm3187_vm7, %v710_v6, %v719_v40  ;;  %v1999_v25 = vrot.slane %v1064_v23, 9  ;;  %v1160_v32 = vrot.slane %v811_v17, 5 }
 0x16d   : > { %1389 = vrot.lane.b32.xlu1 %v3453_v3, %s2675_s19  ;;  %1381 = vrot.lane.b32.xlu0 %v3442_v30, %s2675_s19  ;;  %718 = vst.msk [vmem:[#allocation2 + $0x70] sm:$0xf] %vm440_vm3, %v709_v62  ;;  %721 = vst [vmem:[#allocation2 + $0x74] sm:$0x1] %v720_v54  ;;  %v1025_v57 = vor.u32 %v1024_v10, %v1020_v53  ;;  %v1030_v59 = vrot.slane %v1028_v35, 5  ;;  %v1159_v55 = vrot.slane %v1157_v21, 4 }
 0x16e   : > { %v1158_v50 = vsel %vm3301_vm12, %v1999_v25, %v1157_v21  ;;  %vm1422_vm3 = vcmask 64512   ;;  %vm1439_vm4 = vcmask 97280   ;;  %vm1473_vm6 = vcmask 162816  }
 0x16f   : > { %v1026_v34 = vrot.slane %v1025_v57, 4  ;;  %vm1524_vm9 = vcmask 261120  }
 0x171   : > { %1237 = vrot.lane.b32.xlu1 %v3539_v14, %s2672_s0  ;;  %1229 = vrot.lane.b32.xlu0 %v3584_v27, %s2672_s0  ;;  %v749_v36 = vld [vmem:[#allocation2 + $0x6c] sm:$0x1]  ;;  %v1009_v27 = vshrl.u32 %v799_v28, 16  ;;  %v1031_v19 = vsel %vm3413_vm15, %v1026_v34, %v1030_v59 }
 0x172   : > { %v750_v38 = vsel %vm3187_vm7, 0, %v749_v36  ;;  %vm1490_vm7 = vcmask 195584  }
 0x173   : > { %751 = vst [vmem:[#allocation2 + $0x6c] sm:$0x1] %v750_v38  ;;  %v1011_v52 = vrot.slane %v1009_v27, 4 }
 0x174   : > { %v780_v18 = vld [vmem:[#allocation2 + $0x74] sm:$0x1]  ;;  %v802_v12 = vld [vmem:[#allocation2 + $0x70] sm:$0xf] }
 0x175   : > { %1391 = vrot.lane.b32.xlu1 %v2024_v16, %s2675_s19  ;;  %1383 = vrot.lane.b32.xlu0 %v2020_v48, %s2675_s19  ;;  %v781_v14 = vsel %vm3246_vm10, 0, %v780_v18  ;;  %v1015_v51 = vor.u32 %v1014_v42, %v1011_v52  ;;  %v1042_v5 = vshll.u32 %v802_v12, 16  ;;  %v1164_v52 = vrot.slane %v802_v12, 5  ;;  %v1065_v42 = vld [vmem:[#allocation2 + $0x6c] sm:$0xe] }
 0x176   : > { %782 = vst [vmem:[#allocation2 + $0x74] sm:$0x1] %v781_v14  ;;  %v2000_v10 = vrot.slane %v1065_v42, 9  ;;  %vm1568_vm10 = vcmask 293888  }
 0x177   : > { %v1044_v29 = vrot.slane %v1042_v5, 5  ;;  %v1166_v17 = vrot.slane %v1164_v52, 4 }
 0x178   : > { %v1165_v39 = vsel %vm3301_vm12, %v2000_v10, %v1164_v52 }
 0x179   : > { %1239 = vrot.lane.b32.xlu1 %v3673_v15, %s2672_s0  ;;  %1231 = vrot.lane.b32.xlu0 %v3662_v31, %s2672_s0 }
 0x17a   : > { %v801_v33 = vld [vmem:[#allocation2 + $0x6c] sm:$0xf] }
 0x17b   : > { %v1033_v40 = vshrl.u32 %v801_v33, 16  ;;  %v1036_v56 = vshll.u32 %v801_v33, 16 }
 0x17d   : > { %1277 = vrot.lane.b32.xlu1 %v3453_v3, %s2670_s14  ;;  %1269 = vrot.lane.b32.xlu0 %v3442_v30, %s2670_s14  ;;  %v2025_v3 = vcombine.low %v799_v28, %v800_v11  ;;  %v1016_v30 = vrot.slane %v1015_v51, 4  ;;  %v1035_v6 = vrot.slane %v1033_v40, 4  ;;  %v1038_v47 = vrot.slane %v1036_v56, 5  ;;  %v812_v62 = vld [vmem:[#allocation2 + $0x74] sm:$0x1] }
 0x17e   : > { %v1052_v36 = vshll.u32 %v812_v62, 16  ;;  %v1167_v51 = vrot.slane %v812_v62, 5 }
 0x17f   : > { %v1021_v63 = vsel %vm3413_vm15, %v1016_v30, %v1020_v53  ;;  %v1039_v8 = vor.u32 %v1038_v47, %v1035_v6 }
 0x180   : > { %v2026_v20 = vcombine.low %v1021_v63, %v1031_v19  ;;  %v1054_v14 = vrot.slane %v1052_v36, 5 }
 0x181   : > { %1279 = vrot.lane.b32.xlu1 %v2024_v16, %s2670_s14  ;;  %1271 = vrot.lane.b32.xlu0 %v2020_v48, %s2670_s14  ;;  %v1040_v38 = vrot.slane %v1039_v8, 4  ;;  %s2501_s14 = scalar_lea.vmem %s3878_s4, 1024 }
 0x182   : > { %p2502_p2 = scmp.ne.s32.totalorder %s3878_s4, %s2501_s14 }
 0x183   : > { %v1045_v37 = vsel %vm3413_vm15, %v1040_v38, %v1044_v29 }
 0x184   : > { %p2503_p13 = pnand %p2502_p2, %p4082_p0 }
 0x185   : > { %1297 = vrot.lane.b32.xlu1 %v3631_v1, %s2668_s17  ;;  %1289 = vrot.lane.b32.xlu0 %v3609_v60, %s2668_s17 }
 0x186   : > { %p2504_p1 = pneg %p2503_p13 }
 0x189   : > { %1299 = vrot.lane.b32.xlu1 %v2025_v3, %s2668_s17  ;;  %1291 = vrot.lane.b32.xlu0 %v3474_v4, %s2668_s17  ;;  %s3883_s17 = scalar_lea.hbm %s4081_s7, %s2062_s22 }
 0x18d   : > { %1316 = vrot.lane.b32.xlu1 %v3673_v15, %s2673_s3  ;;  %1308 = vrot.lane.b32.xlu0 %v3662_v31, %s2673_s3  ;;  %v1161_v15 = vsel %vm3301_vm12, %v1159_v55, %v1160_v32  ;;  %v1046_v31 = vshrl.u32 %v802_v12, 16 }
 0x18e   : > { %v2027_v9 = vcombine.low %v1158_v50, %v1161_v15 }
 0x18f   : > { %v1048_v43 = vrot.slane %v1046_v31, 4 }
 0x191   : > { %1318 = vrot.lane.b32.xlu1 %v2026_v20, %s2673_s3  ;;  %1310 = vrot.lane.b32.xlu0 %v3531_v26, %s2673_s3  ;;  %v1049_v11 = vor.u32 %v1048_v43, %v1044_v29 }
 0x193   : > { %v1050_v18 = vrot.slane %v1049_v11, 4 }
 0x195   : > { %1335 = vrot.lane.b32.xlu1 %v2024_v16, %s2671_s11  ;;  %1327 = vrot.lane.b32.xlu0 %v2020_v48, %s2671_s11  ;;  %v2028_v48 = vcombine.low %v801_v33, %v802_v12  ;;  %v1055_v46 = vsel %vm3413_vm15, %v1050_v18, %v1054_v14 }
 0x196   : > { %v3744_v54 = vpop.permute.xlu1 %1293  ;;  %v2029_v53 = vcombine.low %v1045_v37, %v1055_v46 }
 0x197   : > { %v1286_v28 = vpop.permute.xlu0 %1285 }
 0x199   : > { %1337 = vrot.lane.b32.xlu1 %v2027_v9, %s2671_s11  ;;  %1329 = vrot.lane.b32.xlu0 %v3403_v58, %s2671_s11  ;;  %s2676_s11 = smov [#allocation12]  }
 0x19a   : > { %v3749_v16 = vpop.permute.xlu1 %1295  ;;  %s2505_s3 = sshll.u32 %s2676_s11, 4  ;;  %s2506_s3 = int_to_ptr.vmem [resolvable:$false] %s2505_s3 }
 0x19b   : > { %s2507_s29 = scalar_lea.vmem %s2506_s3, 2048  ;;  %p2508_p8 = scmp.lt.s32.totalorder %s3878_s4, %s2506_s3 }
 0x19c   : > { %p2509_p5 = scmp.lt.s32.totalorder %s2507_s29, %s2501_s14 }
 0x19d   : > { %1355 = vrot.lane.b32.xlu1 %v2025_v3, %s2669_s20  ;;  %1347 = vrot.lane.b32.xlu0 %v3474_v4, %s2669_s20  ;;  %v1168_v3 = vsel %vm3301_vm12, %v1166_v17, %v1167_v51 }
 0x19e   : > { %v3763_v45 = vpop.permute.xlu1 %1351  ;;  %p2510_p6 = por %p2509_p5, %p2508_p8 }
 0x1a0   : > { %v3757_v27 = vpop.permute.xlu0 %1287  ;;  %p2511_p9 = pnand %p2510_p6, %p2504_p1 }
 0x1a1   : > { %1357 = vrot.lane.b32.xlu1 %v2028_v48, %s2669_s20  ;;  %1349 = vrot.lane.b32.xlu0 %v3283_v2, %s2669_s20  ;;  %s1783_s20 = scalar_lea.sflag [#allocation5], %s3108_s12 }
 0x1a4   : > { %v1344_v57 = vpop.permute.xlu0 %1343 }
 0x1a5   : > { %1374 = vrot.lane.b32.xlu1 %v2026_v20, %s2674_s18  ;;  %1366 = vrot.lane.b32.xlu0 %v3531_v26, %s2674_s18  ;;  %v2030_v26 = vcombine.low %v1165_v39, %v1168_v3 }
 0x1a7   : > { %v1274_v35 = vpop.permute.xlu1 %1273 }
 0x1a8   : > { %v1268_v34 = vpop.permute.xlu0 %1267 }
 0x1a9   : > { %1376 = vrot.lane.b32.xlu1 %v2029_v53, %s2674_s18  ;;  %1368 = vrot.lane.b32.xlu0 %v3492_v22, %s2674_s18 }
 0x1ab   : > { %v1276_v30 = vpop.permute.xlu1 %1275 }
 0x1ac   : > { %v1324_v22 = vpop.permute.xlu0 %1323 }
 0x1ad   : > { %1393 = vrot.lane.b32.xlu1 %v2027_v9, %s2675_s19  ;;  %1385 = vrot.lane.b32.xlu0 %v3403_v58, %s2675_s19 }
 0x1af   : > { %v1332_v59 = vpop.permute.xlu1 %1331 }
 0x1b0   : > { %v1326_v63 = vpop.permute.xlu0 %1325 }
 0x1b1   : > { %1395 = vrot.lane.b32.xlu1 %v2030_v26, %s2675_s19  ;;  %1387 = vrot.lane.b32.xlu0 %v3398_v41, %s2675_s19 }
 0x1b3   : > { %v1334_v21 = vpop.permute.xlu1 %1333 }
 0x1b7   : > { %v1228_v19 = vpop.permute.xlu1 %1227 }
 0x1b8   : > { %v1403_v49 = vsel %vm1397_vm2, %v3287_v7, %v1228_v19 }
 0x1b9   : > { %v1426_v8 = vsel %vm1422_vm3, %v1403_v49, %v1268_v34 }
 0x1ba   : > { %v1443_v14 = vsel %vm1439_vm4, %v1426_v8, %v3757_v27 }
 0x1bb   : > { %v1236_v23 = vpop.permute.xlu1 %1235 }
 0x1bc   : > { %v1415_v44 = vsel %vm1397_vm2, %v3283_v2, %v1236_v23 }
 0x1bd   : > { %v1434_v11 = vsel %vm1422_vm3, %v1415_v44, %v1276_v30 }
 0x1be   : > { %v1451_v37 = vsel %vm1439_vm4, %v1434_v11, %v3749_v16 }
 0x1bf   : > { %v1266_v24 = vpop.permute.xlu0 %1265  ;;  %v1313_v25 = vpop.permute.xlu1 %1312 }
 0x1c3   : > { %v1234_v20 = vpop.permute.xlu0 %1233  ;;  %v1315_v33 = vpop.permute.xlu1 %1314 }
 0x1c4   : > { %v1412_v12 = vsel %vm1397_vm2, %v3474_v4, %v1234_v20 }
 0x1c5   : > { %v1432_v41 = vsel %vm1422_vm3, %v1412_v12, %v1274_v35 }
 0x1c6   : > { %v1449_v9 = vsel %vm1439_vm4, %v1432_v41, %v3744_v54 }
 0x1c7   : > { %v1305_v55 = vpop.permute.xlu0 %1304  ;;  %v1466_v47 = vsel %vm1456_vm5, %v1449_v9, %v1313_v25 }
 0x1cb   : > { %v1307_v32 = vpop.permute.xlu0 %1306 }
 0x1cc   : > { %v1460_v46 = vsel %vm1456_vm5, %v1443_v14, %v1307_v32 }
 0x1cd   : > { %v1477_v53 = vsel %vm1473_vm6, %v1460_v46, %v1326_v63 }
 0x1cf   : > { %v1346_v58 = vpop.permute.xlu0 %1345 }
 0x1d0   : > { %v1494_v17 = vsel %vm1490_vm7, %v1477_v53, %v1346_v58 }
 0x1d2   : > { %v1354_v50 = vpop.permute.xlu1 %1353 }
 0x1d3   : > { %v1226_v15 = vpop.permute.xlu0 %1225 }
 0x1d4   : > { %v1400_v40 = vsel %vm1397_vm2, %v2001_v0, %v1226_v15  ;;  %v1483_v0 = vsel %vm1473_vm6, %v1466_v47, %v1332_v59 }
 0x1d5   : > { %v1424_v56 = vsel %vm1422_vm3, %v1400_v40, %v1266_v24  ;;  %v1500_v36 = vsel %vm1490_vm7, %v1483_v0, %v3763_v45  ;;  %v1468_v45 = vsel %vm1456_vm5, %v1451_v37, %v1315_v33 }
 0x1d6   : > { %v1441_v31 = vsel %vm1439_vm4, %v1424_v56, %v1286_v28  ;;  %v1371_v5 = vpop.permute.xlu1 %1370  ;;  %v1485_v10 = vsel %vm1473_vm6, %v1468_v45, %v1334_v21 }
 0x1d7   : > { %v1458_v4 = vsel %vm1456_vm5, %v1441_v31, %v1305_v55  ;;  %v1363_v6 = vpop.permute.xlu0 %1362  ;;  %v1517_v7 = vsel %vm1507_vm8, %v1500_v36, %v1371_v5  ;;  %v1502_v27 = vsel %vm1490_vm7, %v1485_v10, %v1354_v50 }
 0x1d8   : > { %v1475_v29 = vsel %vm1473_vm6, %v1458_v4, %v1324_v22 }
 0x1d9   : > { %v1492_v54 = vsel %vm1490_vm7, %v1475_v29, %v1344_v57 }
 0x1da   : > { %v1509_v2 = vsel %vm1507_vm8, %v1492_v54, %v1363_v6 }
 0x1db   : > { %v1373_v43 = vpop.permute.xlu1 %1372  ;;  %v1365_v62 = vpop.permute.xlu0 %1364 }
 0x1dc   : > { %v1519_v16 = vsel %vm1507_vm8, %v1502_v27, %v1373_v43  ;;  %v1511_v51 = vsel %vm1507_vm8, %v1494_v17, %v1365_v62 }
 0x1df   : > { %v1390_v28 = vpop.permute.xlu1 %1389  ;;  %v1382_v48 = vpop.permute.xlu0 %1381 }
 0x1e0   : > { %v1526_v38 = vsel %vm1524_vm9, %v1509_v2, %v1382_v48  ;;  %v1534_v18 = vsel %vm1524_vm9, %v1517_v7, %v1390_v28 }
 0x1e1   : > { %2152 = vmatprep.mubr.msk.bf16.mxu0 %vm1568_vm10, %v1526_v38  ;;  %2160 = vmatprep.mubr.msk.bf16.mxu1 %vm1568_vm10, %v1534_v18 }
 0x1e3   : > { %v1238_v52 = vpop.permute.xlu1 %1237  ;;  %v1230_v42 = vpop.permute.xlu0 %1229 }
 0x1e4   : > { %v1418_v34 = vsel %vm1397_vm2, %v3306_v13, %v1238_v52  ;;  %v1406_v59 = vsel %vm1397_vm2, %v3349_v61, %v1230_v42 }
 0x1e7   : > { %v1392_v57 = vpop.permute.xlu1 %1391  ;;  %v1384_v35 = vpop.permute.xlu0 %1383 }
 0x1e8   : > { %v1536_v39 = vsel %vm1524_vm9, %v1519_v16, %v1392_v57  ;;  %v1528_v3 = vsel %vm1524_vm9, %v1511_v51, %v1384_v35 }
 0x1e9   : > { %2153 = vmatmul.mubr.msk.bf16.vlgmr.msra.gmra.mrb[0].mxu0 %vm1568_vm10, %v1528_v3  ;;  %2161 = vmatmul.mubr.msk.bf16.vlgmr.msra.gmra.mrb[0].mxu1 %vm1568_vm10, %v1536_v39  ;;  %v2031_v39 = vld [vmem:[#allocation11] ss:$0 sm:$0xff] }
 0x1eb   : > { %v1240_v30 = vpop.permute.xlu1 %1239  ;;  %v1232_v26 = vpop.permute.xlu0 %1231 }
 0x1ec   : > { %v1421_v24 = vsel %vm1397_vm2, %v3631_v1, %v1240_v30  ;;  %v1409_v23 = vsel %vm1397_vm2, %v3609_v60, %v1232_v26 }
 0x1ef   : > { %v1278_v22 = vpop.permute.xlu1 %1277  ;;  %v1270_v21 = vpop.permute.xlu0 %1269 }
 0x1f0   : > { %v1436_v63 = vsel %vm1422_vm3, %v1418_v34, %v1278_v22  ;;  %v1428_v19 = vsel %vm1422_vm3, %v1406_v59, %v1270_v21 }
 0x1f3   : > { %v1280_v20 = vpop.permute.xlu1 %1279  ;;  %v1272_v25 = vpop.permute.xlu0 %1271 }
 0x1f4   : > { %v1438_v55 = vsel %vm1422_vm3, %v1421_v24, %v1280_v20  ;;  %v1430_v13 = vsel %vm1422_vm3, %v1409_v23, %v1272_v25 }
 0x1f7   : > { %v1298_v32 = vpop.permute.xlu1 %1297  ;;  %v1290_v61 = vpop.permute.xlu0 %1289 }
 0x1f8   : > { %v1453_v12 = vsel %vm1439_vm4, %v1436_v63, %v1298_v32  ;;  %v1445_v50 = vsel %vm1439_vm4, %v1428_v19, %v1290_v61 }
 0x1fb   : > { %v1300_v33 = vpop.permute.xlu1 %1299  ;;  %v1292_v58 = vpop.permute.xlu0 %1291 }
 0x1fc   : > { %v1455_v40 = vsel %vm1439_vm4, %v1438_v55, %v1300_v33  ;;  %v1447_v56 = vsel %vm1439_vm4, %v1430_v13, %v1292_v58 }
 0x1ff   : > { %v1317_v15 = vpop.permute.xlu1 %1316  ;;  %v1309_v41 = vpop.permute.xlu0 %1308 }
 0x200   : > { %v1470_v1 = vsel %vm1456_vm5, %v1453_v12, %v1317_v15  ;;  %v1462_v60 = vsel %vm1456_vm5, %v1445_v50, %v1309_v41 }
 0x203   : > { %v1319_v31 = vpop.permute.xlu1 %1318  ;;  %v1311_v5 = vpop.permute.xlu0 %1310 }
 0x204   : > { %v1472_v9 = vsel %vm1456_vm5, %v1455_v40, %v1319_v31  ;;  %v1464_v4 = vsel %vm1456_vm5, %v1447_v56, %v1311_v5 }
 0x207   : > { %v1336_v6 = vpop.permute.xlu1 %1335  ;;  %v1328_v47 = vpop.permute.xlu0 %1327 }
 0x208   : > { %v1487_v7 = vsel %vm1473_vm6, %v1470_v1, %v1336_v6  ;;  %v1479_v2 = vsel %vm1473_vm6, %v1462_v60, %v1328_v47 }
 0x20b   : > { %v1338_v29 = vpop.permute.xlu1 %1337  ;;  %v1330_v49 = vpop.permute.xlu0 %1329 }
 0x20c   : > { %v1489_v52 = vsel %vm1473_vm6, %v1472_v9, %v1338_v29  ;;  %v1481_v42 = vsel %vm1473_vm6, %v1464_v4, %v1330_v49 }
 0x20f   : > { %v1356_v44 = vpop.permute.xlu1 %1355  ;;  %v1348_v0 = vpop.permute.xlu0 %1347 }
 0x210   : > { %v1504_v28 = vsel %vm1490_vm7, %v1487_v7, %v1356_v44  ;;  %v1496_v48 = vsel %vm1490_vm7, %v1479_v2, %v1348_v0 }
 0x213   : > { %v1358_v43 = vpop.permute.xlu1 %1357  ;;  %v1350_v62 = vpop.permute.xlu0 %1349 }
 0x214   : > { %v1506_v53 = vsel %vm1490_vm7, %v1489_v52, %v1358_v43  ;;  %v1498_v10 = vsel %vm1490_vm7, %v1481_v42, %v1350_v62 }
 0x217   : > { %v1375_v54 = vpop.permute.xlu1 %1374  ;;  %v1367_v8 = vpop.permute.xlu0 %1366 }
 0x218   : > { %v1521_v38 = vsel %vm1507_vm8, %v1504_v28, %v1375_v54  ;;  %v1513_v18 = vsel %vm1507_vm8, %v1496_v48, %v1367_v8 }
 0x21b   : > { %v1377_v11 = vpop.permute.xlu1 %1376  ;;  %v1369_v36 = vpop.permute.xlu0 %1368 }
 0x21c   : > { %v1523_v17 = vsel %vm1507_vm8, %v1506_v53, %v1377_v11  ;;  %v1515_v27 = vsel %vm1507_vm8, %v1498_v10, %v1369_v36 }
 0x21f   : > { %v1394_v14 = vpop.permute.xlu1 %1393  ;;  %v1386_v37 = vpop.permute.xlu0 %1385 }
 0x220   : > { %v1538_v46 = vsel %vm1524_vm9, %v1521_v38, %v1394_v14  ;;  %v1530_v45 = vsel %vm1524_vm9, %v1513_v18, %v1386_v37 }
 0x221   : > { %2156 = vmatprep.mubr.msk.bf16.mxu0 %vm1568_vm10, %v1530_v45  ;;  %2164 = vmatprep.mubr.msk.bf16.mxu1 %vm1568_vm10, %v1538_v46 }
 0x223   : > { %v1396_v16 = vpop.permute.xlu1 %1395  ;;  %v1388_v51 = vpop.permute.xlu0 %1387 }
 0x224   : > { %v1540_v57 = vsel %vm1524_vm9, %v1523_v17, %v1396_v16  ;;  %v1532_v35 = vsel %vm1524_vm9, %v1515_v27, %v1388_v51 }
 0x225   : > { %2157 = vmatmul.mubr.msk.bf16.gmra.mrb[4].mxu0 %vm1568_vm10, %v1532_v35  ;;  %2165 = vmatmul.mubr.msk.bf16.gmra.mrb[4].mxu1 %vm1568_vm10, %v1540_v57 }
 0x2bc   : > { %v2154_v3 = vpop.f32.mrb[0].mxu0  ;;  %v2162_v30 = vpop.f32.mrb[0].mxu1 }
 0x2bd   : > { %v1632_v26 = vadd.f32 %v2154_v3, %v2031_v39  ;;  %v1664_v34 = vadd.f32 %v2162_v30, %v2031_v39  ;;  %v1623_v59 = vpop.f32.mrb[1].mxu0  ;;  %v1655_v22 = vpop.f32.mrb[1].mxu1 }
 0x2be   : > { %v1624_v21 = vadd.f32 %v2031_v39, %v1623_v59  ;;  %v1656_v63 = vadd.f32 %v2031_v39, %v1655_v22  ;;  %v2155_v19 = vpop.f32.mrb[2].mxu0  ;;  %v2163_v24 = vpop.f32.mrb[2].mxu1 }
 0x2bf   : > { %v1635_v23 = vadd.f32 %v2155_v19, %v2031_v39  ;;  %v1667_v20 = vadd.f32 %v2163_v24, %v2031_v39  ;;  %v1626_v25 = vpop.f32.mrb[3].mxu0  ;;  %v1658_v55 = vpop.f32.mrb[3].mxu1  ;;  %v1688_v61 = vmax.f32 %v1632_v26, 0.0  ;;  %v1696_v33 = vmax.f32 %v1664_v34, 0.0 }
 0x2c0   : > { %v1627_v13 = vadd.f32 %v2031_v39, %v1626_v25  ;;  %v1659_v32 = vadd.f32 %v2031_v39, %v1658_v55  ;;  %v1686_v50 = vmax.f32 %v1624_v21, 0.0  ;;  %v1694_v15 = vmax.f32 %v1656_v63, 0.0 }
 0x2c1   : > { %v1689_v58 = vmax.f32 %v1635_v23, 0.0  ;;  %v1697_v12 = vmax.f32 %v1667_v20, 0.0 }
 0x2c2   : > { %v1687_v41 = vmax.f32 %v1627_v13, 0.0  ;;  %v1695_v1 = vmax.f32 %v1659_v32, 0.0 }
 0x2c3   : > { %v2096_v60 = vpack.c.bf16 %v1689_v58, %v1688_v61  ;;  %v2116_v40 = vpack.c.bf16 %v1697_v12, %v1696_v33 }
 0x2c4   : > { %v2091_v56 = vpack.c.bf16 %v1687_v41, %v1686_v50  ;;  %v2111_v31 = vpack.c.bf16 %v1695_v1, %v1694_v15 }
 0x2c5   : > { %2128 = vst [vmem:[%s3869_s16 + $0x8] sm:$0xff] %v2096_v60   ;;  %2132 = vst [vmem:[%s3869_s16 + $0x28] sm:$0xff] %v2116_v40  }
 0x2c6   : > { %2092 = vst [vmem:[%s3869_s16] sm:$0xff] %v2091_v56   ;;  %2131 = vst [vmem:[%s3869_s16 + $0x20] sm:$0xff] %v2111_v31  }
 0x2f8   : > { %v2158_v5 = vpop.f32.mrb[4].mxu0  ;;  %v2166_v9 = vpop.f32.mrb[4].mxu1 }
 0x2f9   : > { %v1648_v4 = vadd.f32 %v2158_v5, %v2031_v39  ;;  %v1680_v6 = vadd.f32 %v2166_v9, %v2031_v39  ;;  %v1639_v47 = vpop.f32.mrb[5].mxu0  ;;  %v1671_v29 = vpop.f32.mrb[5].mxu1 }
 0x2fa   : > { %v1640_v49 = vadd.f32 %v2031_v39, %v1639_v47  ;;  %v1672_v44 = vadd.f32 %v2031_v39, %v1671_v29  ;;  %v2159_v0 = vpop.f32.mrb[6].mxu0  ;;  %v2167_v43 = vpop.f32.mrb[6].mxu1 }
 0x2fb   : > { %v1651_v62 = vadd.f32 %v2159_v0, %v2031_v39  ;;  %v1683_v54 = vadd.f32 %v2167_v43, %v2031_v39  ;;  %v1642_v8 = vpop.f32.mrb[7].mxu0  ;;  %v1674_v11 = vpop.f32.mrb[7].mxu1  ;;  %v1692_v2 = vmax.f32 %v1648_v4, 0.0  ;;  %v1700_v28 = vmax.f32 %v1680_v6, 0.0 }
 0x2fc   : > { %v1643_v36 = vadd.f32 %v2031_v39, %v1642_v8  ;;  %v1675_v7 = vadd.f32 %v2031_v39, %v1674_v11  ;;  %v1690_v18 = vmax.f32 %v1640_v49, 0.0  ;;  %v1698_v14 = vmax.f32 %v1672_v44, 0.0 }
 0x2fd   : > { %v1693_v48 = vmax.f32 %v1651_v62, 0.0  ;;  %v1701_v38 = vmax.f32 %v1683_v54, 0.0 }
 0x2fe   : > { %v1691_v37 = vmax.f32 %v1643_v36, 0.0  ;;  %v1699_v46 = vmax.f32 %v1675_v7, 0.0 }
 0x2ff   : > { %v2106_v45 = vpack.c.bf16 %v1693_v48, %v1692_v2  ;;  %v2126_v52 = vpack.c.bf16 %v1701_v38, %v1700_v28 }
 0x300   : > { %v2101_v42 = vpack.c.bf16 %v1691_v37, %v1690_v18  ;;  %v2121_v53 = vpack.c.bf16 %v1699_v46, %v1698_v14 }
 0x301   : > { %2130 = vst [vmem:[%s3869_s16 + $0x18] sm:$0xff] %v2106_v45   ;;  %2134 = vst [vmem:[%s3869_s16 + $0x38] sm:$0xff] %v2126_v52  }
 0x302   : > { %2129 = vst [vmem:[%s3869_s16 + $0x10] sm:$0xff] %v2101_v42   ;;  %2133 = vst [vmem:[%s3869_s16 + $0x30] sm:$0xff] %v2121_v53  }
 0x303   : > { %2514 = shalt.err (!%p2511_p9)
}
 0x304   : > { %s2515_s18 = scalar_lea.hbm %s3883_s17, 1024  ;;  %s2519_s16 = scalar_lea.hbm %s4081_s7, 4096 }
 0x305   : > { %p2516_p11 = scmp.ne.s32.totalorder %s3883_s17, %s2515_s18  ;;  %p2520_p4 = scmp.lt.u32.totalorder %s3883_s17, %s4081_s7 }
 0x306   : > { %p2521_p10 = scmp.lt.u32.totalorder %s2519_s16, %s2515_s18  ;;  %p2523_p2 = scmp.lt.u32.totalorder %s2515_s18, %s3883_s17 }
 0x307   : > { %p2517_p3 = pnand %p2516_p11, %p4082_p0 }
 0x308   : > { %p2522_p12 = por %p2521_p10, %p2520_p4 }
 0x309   : > { %p2518_p7 = pneg %p2517_p3 }
 0x30a   : > { %p2524_p13 = por %p2523_p2, %p2522_p12 }
 0x30c   : > { %p2525_p1 = pnand %p2524_p13, %p2518_p7 }
 0x30e   : > { %2528 = shalt.err (!%p2525_p1)
}
 0x30f   : > { %s2677_s30 = smov 64  }
 0x310   : > { %2190 = dma.vmem_to_hbm [thread:$0]  (%p4082_p0), %s3878_s4, 1024, %s3883_s17, %s1783_s20, %s2677_s30, %s2677_s30, %s2672_s0  }
 0x311 PF: > { %p2218_p8 = scmp.ge.s32.totalorder %s2659_s6, 2  ;;  %s1813_s22 = sand.u32 1, %s2631_s24  }
 0x312   : > { %p4083_p5 = scmp.ne.s32.totalorder %s4037_s5, 0  ;;  %s1814_s9 = scalar_lea.sflag [#allocation5], %s1813_s22 }
 0x314   : > { %p2210_p6 = pnand %p2218_p8, %p4083_p5 }
 0x316   : > { %2602 = dma.done.wait (!%p2210_p6), %s1814_s9, 1024  }
 0x317   : > { %2604 = vsyncadd (!%p2210_p6), %s1814_s9, 4294966272  ;;  %s25_s6 = sadd.s32 1, %s2659_s6   ;;  %s4085_s18 = sld [smem:[#allocation19_spill]] }
 0x318   : > { %p3919_p9 = scmp.ge.s32.totalorder %s25_s6, 6   ;;  %s4086_s19 = sld [smem:[#allocation20_spill]] }
 0x319   : > { %s4087_s12 = sld [smem:[#allocation21_spill]]  ;;  %s4088_s0 = smov %s2868_s21 }
 0x31a   : > { %s4089_s27 = sld [smem:[#allocation24_spill]]  ;;  %s4090_s5 = sld [smem:[#allocation25_spill]] }
 0x31b   : > { %s4091_s29 = sld [smem:[#allocation27_spill]]  ;;  %s4092_s30 = sld [smem:[#allocation28_spill]] }
 0x31c   : > { %s4093_s20 = smov %s4116_s28  ;;  %s4095_s22 = smov %s2627_s23 }
 0x31d   : > { %s4096_s23 = smov %s4088_s0  ;;  %s4097_s24 = smov %s2635_s25 }
 0x31e   : > { %s4098_s25 = smov %s2639_s26  ;;  %s4099_s26 = smov %s2957_s15 }
 0x31f   : > { %s4094_s21 = smov %s4087_s12  ;;  %24 = sbr.rel (!%p3919_p9) target bundleno = 20 (0x14), region = 119 }
 0x320   : > { %s4100_s28 = smov %s4090_s5 }
 0x326   :  { %1819 = vsyncpa [#allocation4], 1 }
 0x327   :  { %1821 = vsyncpa [#allocation4 + $0x1], 1 }
 0x328   :  { %1822 = vsyncpa [#allocation7], 1 }
 0x329   :  { %1824 = vsyncpa [#allocation7 + $0x1], 1 }
 0x32a   :  { %1825 = vsyncpa [#allocation10], 1 }
 0x32b   :  { %1826 = vsyncpa [#allocation5], 1 }
 0x32c   :  { %1828 = vsyncpa [#allocation5 + $0x1], 1 }

</bundles_post_ra>
